<compile_context>
chip_gen: v6e
topology: v6e:2x2x1
jax: 0.10.0
libtpu: 0.0.40
codegen_flags: <defaults>
</compile_context>

<pallas_src>
import functools

import jax
import jax.numpy as jnp
from jax import lax
from jax.experimental import pallas as pl
from jax.experimental.pallas import tpu as pltpu


# ----------------------------------------------------------------------------
# Kernel body: one batch tile = TB whole sequences, flattened to (TB*L, C).
# ----------------------------------------------------------------------------
def _tcn_kernel(x_ref, wbuf_ref, bbuf_ref, o_ref, *, plan, L, TB):
    M = TB * L
    f32, bf16 = jnp.float32, jnp.bfloat16

    # Time index of every row within its own sequence (each tile holds whole
    # sequences, so local row index mod L is correct).  Hoisted once, and the
    # per-shift masks are hoisted too (JAX does not CSE broadcasts).
    row_t = lax.broadcasted_iota(jnp.int32, (M, 1), 0) % L
    shifts = sorted({(lp["k"] - 1 - j) * lp["d"]
                     for lp in plan["layers"] for j in range(lp["k"])} - {0})
    masks = {s: row_t >= s for s in shifts if s < L}

    def load_w(off, rows, cols):
        # Static slice of the packed bf16 weight buffer (offsets are
        # sublane-aligned by construction in prepare_tcn_params).
        return wbuf_ref[off:off + rows, 0:cols]

    def load_b(idx, cols):
        return bbuf_ref[idx:idx + 1, 0:cols]            # (1, cols) f32

    def causal_shift(v, s):
        # y[r] = v[r - s] if the source row lies in the same sequence, else 0
        # (== causal left zero-padding; also blocks cross-sequence reads in
        # the flattened layout).  pltpu.roll runs on the XLU; the mask is a
        # single VPU select against a scalar 0.0.
        if s == 0:
            return v
        if s >= L:
            return jnp.zeros_like(v)
        return jnp.where(masks[s], pltpu.roll(v, shift=s, axis=0), 0.0)

    def dilated_conv(v, tap_offs, b_idx, k, d, cin, cout):
        # k per-tap MXU matmuls accumulated in f32 (no (M, k*C) slab build).
        acc = None
        for j, off in enumerate(tap_offs):
            s = (k - 1 - j) * d
            tap = causal_shift(v, s).astype(bf16)
            y = jnp.dot(tap, load_w(off, cin, cout),
                        preferred_element_type=f32)
            acc = y if acc is None else acc + y
        return acc + load_b(b_idx, cout)

    h = x_ref[...].astype(f32)                           # (M, Cin)
    for lp in plan["layers"]:
        k, d, cin, cout = lp["k"], lp["d"], lp["cin"], lp["cout"]
        if lp["wd"] >= 0:                                # 1x1 downsample path
            res = (jnp.dot(h.astype(bf16), load_w(lp["wd"], cin, cout),
                           preferred_element_type=f32)
                   + load_b(lp["bd"], cout))
        else:
            res = h
        # TODO(synk): nn.Dropout is stochastic in training; eval-mode identity here.
        h1 = jnp.maximum(dilated_conv(h, lp["w1"], lp["b1"], k, d, cin, cout), 0.0)
        h2 = jnp.maximum(dilated_conv(h1, lp["w2"], lp["b2"], k, d, cout, cout), 0.0)
        h = jnp.maximum(h2 + res, 0.0)

    # Head: tanh(linear(last timestep of each sequence)).  TB static
    # single-row reads replace the old one-hot selector matmul.
    hp = plan["head"]
    h_last = jnp.concatenate(
        [h[t * L + (L - 1): t * L + L, :] for t in range(TB)], axis=0)  # (TB, C)
    o = (jnp.dot(h_last.astype(bf16), load_w(hp["off"], hp["cin"], hp["cout"]),
                 preferred_element_type=f32)
         + load_b(hp["b"], hp["cout"]))
    o_ref[...] = jnp.tanh(o)


# ----------------------------------------------------------------------------
# Wrapper: grid over batch tiles.
# ----------------------------------------------------------------------------
def fused_tcn_forward(inputs, wbuf, bbuf, plan, out_dim, *, seq_tile=8):
    """inputs: (N, L, Cin) float32.  Returns (N, out_dim) float32."""
    N, L, Cin = inputs.shape
    TB = min(seq_tile, N)
    assert N % TB == 0, "batch must be divisible by the sequence tile"
    assert TB == N or TB % 8 == 0, "partial batch tile must be a multiple of 8"
    x2d = inputs.reshape(N * L, Cin)

    kernel = functools.partial(_tcn_kernel, plan=plan, L=L, TB=TB)
    return pl.pallas_call(
        kernel,
        grid=(N // TB,),
        in_specs=[
            # Batched activation slab: blocked (defaults to VMEM), pipelined.
            pl.BlockSpec((TB * L, Cin), lambda b: (b, 0)),
            # Packed weights / biases: whole arrays resident in VMEM.
            pl.BlockSpec(memory_space=pltpu.MemorySpace.VMEM),
            pl.BlockSpec(memory_space=pltpu.MemorySpace.VMEM),
        ],
        out_specs=pl.BlockSpec((TB, out_dim), lambda b: (b, 0)),
        out_shape=jax.ShapeDtypeStruct((N, out_dim), jnp.float32),
        compiler_params=pltpu.CompilerParams(
            dimension_semantics=("parallel",),      # both TCs on v7x
            vmem_limit_bytes=32 * 1024 * 1024,
        ),
    )(x2d, wbuf, bbuf)


# ----------------------------------------------------------------------------
# Parameter construction (mirrors the PyTorch module's __init__ shapes)
# ----------------------------------------------------------------------------
def weight_norm_reparam(v):
    """PyTorch weight_norm(dim=0): w = g * v / ||v||, g initialized to ||v||."""
    norm = jnp.sqrt(jnp.sum(v * v, axis=tuple(range(1, v.ndim)), keepdims=True))
    norm = jnp.maximum(norm, 1e-12)          # guard against zero-norm filters
    g = norm
    return g * v / norm                       # == v at init (kept for fidelity)


def make_tcn_params(key, input_size, output_size, num_channels, kernel_size):
    params = []
    for i, cout in enumerate(num_channels):
        cin = input_size if i == 0 else num_channels[i - 1]
        d = 2 ** i
        key, k1, k2, k3, k4, k5, k6 = jax.random.split(key, 7)
        w1_t = weight_norm_reparam(
            0.01 * jax.random.normal(k1, (cout, cin, kernel_size), jnp.float32))
        b1 = 0.1 * jax.random.normal(k2, (cout,), jnp.float32)
        w2_t = weight_norm_reparam(
            0.01 * jax.random.normal(k3, (cout, cout, kernel_size), jnp.float32))
        b2 = 0.1 * jax.random.normal(k4, (cout,), jnp.float32)
        if cin != cout:
            wd_t = 0.01 * jax.random.normal(k5, (cout, cin, 1), jnp.float32)
            bd = 0.1 * jax.random.normal(k6, (cout,), jnp.float32)
        else:
            wd_t, bd = None, None
        params.append(dict(w1_t=w1_t, b1=b1, w2_t=w2_t, b2=b2,
                           wd_t=wd_t, bd=bd, dilation=d))
    key, k7, k8 = jax.random.split(key, 3)
    w_lin_t = 0.1 * jax.random.normal(k7, (output_size, num_channels[-1]), jnp.float32)
    b_lin = 0.1 * jax.random.normal(k8, (output_size,), jnp.float32)
    return params, w_lin_t, b_lin


def prepare_tcn_params(params, w_lin_t, b_lin, kernel_size,
                       matmul_dtype=jnp.bfloat16):
    """One-time conversion of torch-layout params into the fused-kernel layout.

    Every weight matrix is packed into ONE (rows, Cmax) buffer (bf16,
    16-row-aligned offsets to match bf16 sublane packing) and every bias into
    ONE (n_bias, Cmax) f32 buffer, so the kernel receives two operands instead
    of ~6 per layer.  All transposes/reshapes are hoisted here.
    """
    mats, biases = [], []
    row_off = 0

    def add_mat(m):
        nonlocal row_off
        off = row_off
        mats.append((off, m))
        row_off += ((m.shape[0] + 15) // 16) * 16     # bf16 sublane alignment
        return off

    def add_bias(b):
        biases.append(b)
        return len(biases) - 1

    layers = []
    for p in params:
        k = kernel_size
        cout, cin, _ = p["w1_t"].shape
        # torch conv weight (O, I, K): tap j multiplies the input shifted by
        # (k-1-j)*dilation, with per-tap matrix w[:, :, j].T of shape (I, O).
        w1 = tuple(add_mat(jnp.transpose(p["w1_t"][:, :, j], (1, 0)))
                   for j in range(k))
        b1 = add_bias(p["b1"])
        w2 = tuple(add_mat(jnp.transpose(p["w2_t"][:, :, j], (1, 0)))
                   for j in range(k))
        b2 = add_bias(p["b2"])
        if p["wd_t"] is not None:
            wd = add_mat(jnp.transpose(p["wd_t"][:, :, 0], (1, 0)))
            bd = add_bias(p["bd"])
        else:
            wd, bd = -1, -1
        layers.append(dict(k=k, d=p["dilation"], cin=cin, cout=cout,
                           w1=w1, b1=b1, w2=w2, b2=b2, wd=wd, bd=bd))

    out_dim, c_last = w_lin_t.shape
    head = dict(off=add_mat(jnp.transpose(w_lin_t, (1, 0))),
                cin=c_last, cout=out_dim, b=add_bias(b_lin))

    cmax = max(m.shape[1] for _, m in mats)
    wbuf = jnp.zeros((row_off, cmax), jnp.float32)
    for off, m in mats:
        wbuf = wbuf.at[off:off + m.shape[0], :m.shape[1]].set(m)
    bbuf = jnp.zeros((len(biases), cmax), jnp.float32)
    for i, b in enumerate(biases):
        bbuf = bbuf.at[i, :b.shape[0]].set(b)

    plan = dict(layers=tuple(layers), head=head)
    return wbuf.astype(matmul_dtype), bbuf, plan, out_dim


# ----------------------------------------------------------------------------
# Pure-JAX reference (independent, via lax.conv_general_dilated) for checking
# ----------------------------------------------------------------------------
def tcn_forward_ref(inputs, params, w_lin_t, b_lin, kernel_size):
    x = jnp.transpose(inputs.astype(jnp.float32), (0, 2, 1))  # (N, C, L)

    def conv(x, w, b, d, pad):
        y = lax.conv_general_dilated(x, w, (1,), [(pad, 0)], rhs_dilation=(d,),
                                     dimension_numbers=("NCH", "OIH", "NCH"))
        return y + b[None, :, None]

    for p in params:
        d = p["dilation"]
        pad = (kernel_size - 1) * d
        h = jnp.maximum(conv(x, p["w1_t"], p["b1"], d, pad), 0.0)
        h = jnp.maximum(conv(h, p["w2_t"], p["b2"], d, pad), 0.0)
        if p["wd_t"] is None:
            res = x
        else:
            res = (jnp.einsum("oc,ncl->nol", p["wd_t"][:, :, 0], x)
                   + p["bd"][None, :, None])
        x = jnp.maximum(h + res, 0.0)
    last = x[:, :, -1]
    return jnp.tanh(last @ w_lin_t.T + b_lin)


# ----------------------------------------------------------------------------
if __name__ == "__main__":
    # Module hyperparameters (small, consistent with TCN(__init__)):
    input_size = 6
    output_size = 5
    num_channels = (16, 16)
    kernel_size = 2
    N, L = 16, 16            # 16 sequences of length 16 -> 2 batch tiles of 8

    key = jax.random.PRNGKey(0)
    kp, kx, ki, kt = jax.random.split(key, 4)
    params, w_lin_t, b_lin = make_tcn_params(
        kp, input_size, output_size, num_channels, kernel_size)
    wbuf, bbuf, plan, out_dim = prepare_tcn_params(
        params, w_lin_t, b_lin, kernel_size)

    # TCN.forward permutes (N, L, C_in) -> (N, C_in, L) for Conv1d; the fused
    # kernel's layout is (N, L, C), so the incoming tensor is used as-is.
    inputs = jax.random.normal(kx, (N, L, input_size), jnp.float32)
    img = jax.random.normal(ki, (1,), jnp.float32)       # unused by forward
    tactile = jax.random.normal(kt, (1,), jnp.float32)   # unused by forward

    out = fused_tcn_forward(inputs, wbuf, bbuf, plan, out_dim, seq_tile=8)
    out = jax.block_until_ready(out)

    ref = tcn_forward_ref(inputs, params, w_lin_t, b_lin, kernel_size)
    assert out.shape == (N, output_size)
    # Kernel uses bf16 MXU operands (f32 accumulate) per the perf review, so
    # compare against the f32 reference with a matching tolerance.
    assert jnp.allclose(out, ref, atol=2e-2, rtol=2e-2), (out, ref)

    print("KERNEL_OK")
</pallas_src>

<mosaic_0001>
module attributes {stable_mosaic.version = 11 : i64} {
  func.func @_tcn_kernel(%arg0: i32, %arg1: memref<128x6xf32, #tpu.memory_space<vmem>>, %arg2: memref<160x16xbf16, #tpu.memory_space<vmem>>, %arg3: memref<6x16xf32, #tpu.memory_space<vmem>>, %arg4: memref<8x5xf32, #tpu.memory_space<vmem>>) attributes {dimension_semantics = [#tpu.dimension_semantics<parallel>], iteration_bounds = array<i64: 2>, scalar_prefetch = 0 : i64, scratch_operands = 0 : i64, tpu.core_type = #tpu.core_type<tc>, window_params = [{transform_indices = @transform_0, window_bounds = array<i64: 128, 6>}, {pipeline_mode = #tpu.pipeline_mode<synchronous>, transform_indices = @transform_1, window_bounds = array<i64: 160, 16>}, {pipeline_mode = #tpu.pipeline_mode<synchronous>, transform_indices = @transform_2, window_bounds = array<i64: 6, 16>}, {transform_indices = @transform_3, window_bounds = array<i64: 8, 5>}]} {
    %0 = tpu.iota {dimensions = array<i32: 0>} : vector<128x1xi32>
    %c16_i32 = arith.constant 16 : i32
    %c0_i32 = arith.constant 0 : i32
    %1 = arith.cmpi eq, %c16_i32, %c0_i32 : i32
    %c1_i32 = arith.constant 1 : i32
    %2 = arith.select %1, %c1_i32, %c16_i32 : i32
    %3 = vector.broadcast %2 : i32 to vector<128x1xi32>
    %4 = arith.remsi %0, %3 : vector<128x1xi32>
    %c0_i32_0 = arith.constant 0 : i32
    %5 = vector.broadcast %c0_i32_0 : i32 to vector<128x1xi32>
    %6 = arith.cmpi ne, %4, %5 : vector<128x1xi32>
    %c0_i32_1 = arith.constant 0 : i32
    %7 = vector.broadcast %c0_i32_1 : i32 to vector<128x1xi32>
    %8 = arith.cmpi slt, %4, %7 : vector<128x1xi32>
    %c0_i32_2 = arith.constant 0 : i32
    %9 = arith.cmpi slt, %2, %c0_i32_2 : i32
    %10 = vector.broadcast %9 : i1 to vector<128x1xi1>
    %11 = vector.broadcast %10 : vector<128x1xi1> to vector<128x1xi1>
    %12 = arith.xori %8, %11 : vector<128x1xi1>
    %13 = arith.andi %12, %6 : vector<128x1xi1>
    %14 = vector.broadcast %2 : i32 to vector<128x1xi32>
    %15 = arith.addi %4, %14 : vector<128x1xi32>
    %16 = arith.select %13, %15, %4 : vector<128x1xi1>, vector<128x1xi32>
    %c1_i32_3 = arith.constant 1 : i32
    %17 = vector.broadcast %c1_i32_3 : i32 to vector<128x1xi32>
    %18 = arith.cmpi sge, %16, %17 : vector<128x1xi32>
    %c2_i32 = arith.constant 2 : i32
    %19 = vector.broadcast %c2_i32 : i32 to vector<128x1xi32>
    %20 = arith.cmpi sge, %16, %19 : vector<128x1xi32>
    %c0 = arith.constant 0 : index
    %c0_4 = arith.constant 0 : index
    %21 = vector.load %arg1[%c0, %c0_4] : memref<128x6xf32, #tpu.memory_space<vmem>>, vector<128x6xf32>
    %22 = arith.truncf %21 : vector<128x6xf32> to vector<128x6xbf16>
    %c64 = arith.constant 64 : index
    %c0_5 = arith.constant 0 : index
    %23 = vector.load %arg2[%c64, %c0_5] : memref<160x16xbf16, #tpu.memory_space<vmem>>, vector<6x16xbf16>
    %cst = arith.constant dense<0.000000e+00> : vector<128x16xf32>
    %24 = tpu.matmul %22, %23, %cst {dimension_numbers = #tpu.dot_dimension_numbers<[1], [0], [0], [1], [0, 0, 1, 1], [], []>} : vector<128x6xbf16>, vector<6x16xbf16>, vector<128x16xf32> -> vector<128x16xf32>
    %c2 = arith.constant 2 : index
    %c0_6 = arith.constant 0 : index
    %25 = vector.load %arg3[%c2, %c0_6] : memref<6x16xf32, #tpu.memory_space<vmem>>, vector<1x16xf32>
    %26 = vector.broadcast %25 : vector<1x16xf32> to vector<128x16xf32>
    %27 = arith.addf %24, %26 : vector<128x16xf32>
    %c1_i32_7 = arith.constant 1 : i32
    %28 = tpu.dynamic_rotate %21 by %c1_i32_7 dim 0 : vector<128x6xf32>, i32 -> vector<128x6xf32>
    %cst_8 = arith.constant 0.000000e+00 : f32
    %29 = vector.shape_cast %18 : vector<128x1xi1> to vector<128x1xi1>
    %30 = vector.broadcast %29 : vector<128x1xi1> to vector<128x6xi1>
    %31 = vector.broadcast %cst_8 : f32 to vector<128x6xf32>
    %32 = arith.select %30, %28, %31 : vector<128x6xi1>, vector<128x6xf32>
    %33 = arith.truncf %32 : vector<128x6xf32> to vector<128x6xbf16>
    %c0_9 = arith.constant 0 : index
    %c0_10 = arith.constant 0 : index
    %34 = vector.load %arg2[%c0_9, %c0_10] : memref<160x16xbf16, #tpu.memory_space<vmem>>, vector<6x16xbf16>
    %cst_11 = arith.constant dense<0.000000e+00> : vector<128x16xf32>
    %35 = tpu.matmul %33, %34, %cst_11 {dimension_numbers = #tpu.dot_dimension_numbers<[1], [0], [0], [1], [0, 0, 1, 1], [], []>} : vector<128x6xbf16>, vector<6x16xbf16>, vector<128x16xf32> -> vector<128x16xf32>
    %36 = arith.truncf %21 : vector<128x6xf32> to vector<128x6xbf16>
    %c16 = arith.constant 16 : index
    %c0_12 = arith.constant 0 : index
    %37 = vector.load %arg2[%c16, %c0_12] : memref<160x16xbf16, #tpu.memory_space<vmem>>, vector<6x16xbf16>
    %cst_13 = arith.constant dense<0.000000e+00> : vector<128x16xf32>
    %38 = tpu.matmul %36, %37, %cst_13 {dimension_numbers = #tpu.dot_dimension_numbers<[1], [0], [0], [1], [0, 0, 1, 1], [], []>} : vector<128x6xbf16>, vector<6x16xbf16>, vector<128x16xf32> -> vector<128x16xf32>
    %39 = arith.addf %35, %38 : vector<128x16xf32>
    %c0_14 = arith.constant 0 : index
    %c0_15 = arith.constant 0 : index
    %40 = vector.load %arg3[%c0_14, %c0_15] : memref<6x16xf32, #tpu.memory_space<vmem>>, vector<1x16xf32>
    %41 = vector.broadcast %40 : vector<1x16xf32> to vector<128x16xf32>
    %42 = arith.addf %39, %41 : vector<128x16xf32>
    %cst_16 = arith.constant 0.000000e+00 : f32
    %43 = vector.broadcast %cst_16 : f32 to vector<128x16xf32>
    %44 = arith.maximumf %42, %43 : vector<128x16xf32>
    %c1_i32_17 = arith.constant 1 : i32
    %45 = tpu.dynamic_rotate %44 by %c1_i32_17 dim 0 : vector<128x16xf32>, i32 -> vector<128x16xf32>
    %cst_18 = arith.constant 0.000000e+00 : f32
    %46 = vector.shape_cast %18 : vector<128x1xi1> to vector<128x1xi1>
    %47 = vector.broadcast %46 : vector<128x1xi1> to vector<128x16xi1>
    %48 = vector.broadcast %cst_18 : f32 to vector<128x16xf32>
    %49 = arith.select %47, %45, %48 : vector<128x16xi1>, vector<128x16xf32>
    %50 = arith.truncf %49 : vector<128x16xf32> to vector<128x16xbf16>
    %c32 = arith.constant 32 : index
    %c0_19 = arith.constant 0 : index
    %51 = vector.load %arg2[%c32, %c0_19] : memref<160x16xbf16, #tpu.memory_space<vmem>>, vector<16x16xbf16>
    %cst_20 = arith.constant dense<0.000000e+00> : vector<128x16xf32>
    %52 = tpu.matmul %50, %51, %cst_20 {dimension_numbers = #tpu.dot_dimension_numbers<[1], [0], [0], [1], [0, 0, 1, 1], [], []>} : vector<128x16xbf16>, vector<16x16xbf16>, vector<128x16xf32> -> vector<128x16xf32>
    %53 = arith.truncf %44 : vector<128x16xf32> to vector<128x16xbf16>
    %c48 = arith.constant 48 : index
    %c0_21 = arith.constant 0 : index
    %54 = vector.load %arg2[%c48, %c0_21] : memref<160x16xbf16, #tpu.memory_space<vmem>>, vector<16x16xbf16>
    %cst_22 = arith.constant dense<0.000000e+00> : vector<128x16xf32>
    %55 = tpu.matmul %53, %54, %cst_22 {dimension_numbers = #tpu.dot_dimension_numbers<[1], [0], [0], [1], [0, 0, 1, 1], [], []>} : vector<128x16xbf16>, vector<16x16xbf16>, vector<128x16xf32> -> vector<128x16xf32>
    %56 = arith.addf %52, %55 : vector<128x16xf32>
    %c1 = arith.constant 1 : index
    %c0_23 = arith.constant 0 : index
    %57 = vector.load %arg3[%c1, %c0_23] : memref<6x16xf32, #tpu.memory_space<vmem>>, vector<1x16xf32>
    %58 = vector.broadcast %57 : vector<1x16xf32> to vector<128x16xf32>
    %59 = arith.addf %56, %58 : vector<128x16xf32>
    %cst_24 = arith.constant 0.000000e+00 : f32
    %60 = vector.broadcast %cst_24 : f32 to vector<128x16xf32>
    %61 = arith.maximumf %59, %60 : vector<128x16xf32>
    %62 = arith.addf %61, %27 : vector<128x16xf32>
    %cst_25 = arith.constant 0.000000e+00 : f32
    %63 = vector.broadcast %cst_25 : f32 to vector<128x16xf32>
    %64 = arith.maximumf %62, %63 : vector<128x16xf32>
    %c2_i32_26 = arith.constant 2 : i32
    %65 = tpu.dynamic_rotate %64 by %c2_i32_26 dim 0 : vector<128x16xf32>, i32 -> vector<128x16xf32>
    %cst_27 = arith.constant 0.000000e+00 : f32
    %66 = vector.shape_cast %20 : vector<128x1xi1> to vector<128x1xi1>
    %67 = vector.broadcast %66 : vector<128x1xi1> to vector<128x16xi1>
    %68 = vector.broadcast %cst_27 : f32 to vector<128x16xf32>
    %69 = arith.select %67, %65, %68 : vector<128x16xi1>, vector<128x16xf32>
    %70 = arith.truncf %69 : vector<128x16xf32> to vector<128x16xbf16>
    %c80 = arith.constant 80 : index
    %c0_28 = arith.constant 0 : index
    %71 = vector.load %arg2[%c80, %c0_28] : memref<160x16xbf16, #tpu.memory_space<vmem>>, vector<16x16xbf16>
    %cst_29 = arith.constant dense<0.000000e+00> : vector<128x16xf32>
    %72 = tpu.matmul %70, %71, %cst_29 {dimension_numbers = #tpu.dot_dimension_numbers<[1], [0], [0], [1], [0, 0, 1, 1], [], []>} : vector<128x16xbf16>, vector<16x16xbf16>, vector<128x16xf32> -> vector<128x16xf32>
    %73 = arith.truncf %64 : vector<128x16xf32> to vector<128x16xbf16>
    %c96 = arith.constant 96 : index
    %c0_30 = arith.constant 0 : index
    %74 = vector.load %arg2[%c96, %c0_30] : memref<160x16xbf16, #tpu.memory_space<vmem>>, vector<16x16xbf16>
    %cst_31 = arith.constant dense<0.000000e+00> : vector<128x16xf32>
    %75 = tpu.matmul %73, %74, %cst_31 {dimension_numbers = #tpu.dot_dimension_numbers<[1], [0], [0], [1], [0, 0, 1, 1], [], []>} : vector<128x16xbf16>, vector<16x16xbf16>, vector<128x16xf32> -> vector<128x16xf32>
    %76 = arith.addf %72, %75 : vector<128x16xf32>
    %c3 = arith.constant 3 : index
    %c0_32 = arith.constant 0 : index
    %77 = vector.load %arg3[%c3, %c0_32] : memref<6x16xf32, #tpu.memory_space<vmem>>, vector<1x16xf32>
    %78 = vector.broadcast %77 : vector<1x16xf32> to vector<128x16xf32>
    %79 = arith.addf %76, %78 : vector<128x16xf32>
    %cst_33 = arith.constant 0.000000e+00 : f32
    %80 = vector.broadcast %cst_33 : f32 to vector<128x16xf32>
    %81 = arith.maximumf %79, %80 : vector<128x16xf32>
    %c2_i32_34 = arith.constant 2 : i32
    %82 = tpu.dynamic_rotate %81 by %c2_i32_34 dim 0 : vector<128x16xf32>, i32 -> vector<128x16xf32>
    %cst_35 = arith.constant 0.000000e+00 : f32
    %83 = vector.shape_cast %20 : vector<128x1xi1> to vector<128x1xi1>
    %84 = vector.broadcast %83 : vector<128x1xi1> to vector<128x16xi1>
    %85 = vector.broadcast %cst_35 : f32 to vector<128x16xf32>
    %86 = arith.select %84, %82, %85 : vector<128x16xi1>, vector<128x16xf32>
    %87 = arith.truncf %86 : vector<128x16xf32> to vector<128x16xbf16>
    %c112 = arith.constant 112 : index
    %c0_36 = arith.constant 0 : index
    %88 = vector.load %arg2[%c112, %c0_36] : memref<160x16xbf16, #tpu.memory_space<vmem>>, vector<16x16xbf16>
    %cst_37 = arith.constant dense<0.000000e+00> : vector<128x16xf32>
    %89 = tpu.matmul %87, %88, %cst_37 {dimension_numbers = #tpu.dot_dimension_numbers<[1], [0], [0], [1], [0, 0, 1, 1], [], []>} : vector<128x16xbf16>, vector<16x16xbf16>, vector<128x16xf32> -> vector<128x16xf32>
    %90 = arith.truncf %81 : vector<128x16xf32> to vector<128x16xbf16>
    %c128 = arith.constant 128 : index
    %c0_38 = arith.constant 0 : index
    %91 = vector.load %arg2[%c128, %c0_38] : memref<160x16xbf16, #tpu.memory_space<vmem>>, vector<16x16xbf16>
    %cst_39 = arith.constant dense<0.000000e+00> : vector<128x16xf32>
    %92 = tpu.matmul %90, %91, %cst_39 {dimension_numbers = #tpu.dot_dimension_numbers<[1], [0], [0], [1], [0, 0, 1, 1], [], []>} : vector<128x16xbf16>, vector<16x16xbf16>, vector<128x16xf32> -> vector<128x16xf32>
    %93 = arith.addf %89, %92 : vector<128x16xf32>
    %c4 = arith.constant 4 : index
    %c0_40 = arith.constant 0 : index
    %94 = vector.load %arg3[%c4, %c0_40] : memref<6x16xf32, #tpu.memory_space<vmem>>, vector<1x16xf32>
    %95 = vector.broadcast %94 : vector<1x16xf32> to vector<128x16xf32>
    %96 = arith.addf %93, %95 : vector<128x16xf32>
    %cst_41 = arith.constant 0.000000e+00 : f32
    %97 = vector.broadcast %cst_41 : f32 to vector<128x16xf32>
    %98 = arith.maximumf %96, %97 : vector<128x16xf32>
    %99 = arith.addf %98, %64 : vector<128x16xf32>
    %cst_42 = arith.constant 0.000000e+00 : f32
    %100 = vector.broadcast %cst_42 : f32 to vector<128x16xf32>
    %101 = arith.maximumf %99, %100 : vector<128x16xf32>
    %102 = vector.extract_strided_slice %101 {offsets = [15, 0], sizes = [1, 16], strides = [1, 1]} : vector<128x16xf32> to vector<1x16xf32>
    %103 = vector.extract_strided_slice %101 {offsets = [31, 0], sizes = [1, 16], strides = [1, 1]} : vector<128x16xf32> to vector<1x16xf32>
    %104 = vector.extract_strided_slice %101 {offsets = [47, 0], sizes = [1, 16], strides = [1, 1]} : vector<128x16xf32> to vector<1x16xf32>
    %105 = vector.extract_strided_slice %101 {offsets = [63, 0], sizes = [1, 16], strides = [1, 1]} : vector<128x16xf32> to vector<1x16xf32>
    %106 = vector.extract_strided_slice %101 {offsets = [79, 0], sizes = [1, 16], strides = [1, 1]} : vector<128x16xf32> to vector<1x16xf32>
    %107 = vector.extract_strided_slice %101 {offsets = [95, 0], sizes = [1, 16], strides = [1, 1]} : vector<128x16xf32> to vector<1x16xf32>
    %108 = vector.extract_strided_slice %101 {offsets = [111, 0], sizes = [1, 16], strides = [1, 1]} : vector<128x16xf32> to vector<1x16xf32>
    %109 = vector.extract_strided_slice %101 {offsets = [127, 0], sizes = [1, 16], strides = [1, 1]} : vector<128x16xf32> to vector<1x16xf32>
    %110 = tpu.concatenate %102, %103, %104, %105, %106, %107, %108, %109 in 0 : vector<1x16xf32>, vector<1x16xf32>, vector<1x16xf32>, vector<1x16xf32>, vector<1x16xf32>, vector<1x16xf32>, vector<1x16xf32>, vector<1x16xf32> -> vector<8x16xf32>
    %111 = arith.truncf %110 : vector<8x16xf32> to vector<8x16xbf16>
    %c144 = arith.constant 144 : index
    %c0_43 = arith.constant 0 : index
    %112 = vector.load %arg2[%c144, %c0_43] : memref<160x16xbf16, #tpu.memory_space<vmem>>, vector<16x5xbf16>
    %cst_44 = arith.constant dense<0.000000e+00> : vector<8x5xf32>
    %113 = tpu.matmul %111, %112, %cst_44 {dimension_numbers = #tpu.dot_dimension_numbers<[1], [0], [0], [1], [0, 0, 1, 1], [], []>} : vector<8x16xbf16>, vector<16x5xbf16>, vector<8x5xf32> -> vector<8x5xf32>
    %c5 = arith.constant 5 : index
    %c0_45 = arith.constant 0 : index
    %114 = vector.load %arg3[%c5, %c0_45] : memref<6x16xf32, #tpu.memory_space<vmem>>, vector<1x5xf32>
    %115 = vector.broadcast %114 : vector<1x5xf32> to vector<8x5xf32>
    %116 = arith.addf %113, %115 : vector<8x5xf32>
    %117 = math.tanh %116 : vector<8x5xf32>
    %c0_46 = arith.constant 0 : index
    %c0_47 = arith.constant 0 : index
    %118 = vector.load %arg4[%c0_46, %c0_47] : memref<8x5xf32, #tpu.memory_space<vmem>>, vector<8x5xf32>
    tpu.vector_store %arg4[%c0_46, %c0_47], %117 {strides = array<i32>} : memref<8x5xf32, #tpu.memory_space<vmem>>, vector<8x5xf32>,
    return
  }
  func.func @transform_0(%arg0: i32) -> (i32, i32) {
    %c0_i32 = arith.constant 0 : i32
    %c0_i32_0 = arith.constant 0 : i32
    return %arg0, %c0_i32 : i32, i32
  }
  func.func @transform_1(%arg0: i32) -> (i32, i32) {
    %c0_i32 = arith.constant 0 : i32
    %c0_i32_0 = arith.constant 0 : i32
    %c0_i32_1 = arith.constant 0 : i32
    return %c0_i32, %c0_i32_0 : i32, i32
  }
  func.func @transform_2(%arg0: i32) -> (i32, i32) {
    %c0_i32 = arith.constant 0 : i32
    %c0_i32_0 = arith.constant 0 : i32
    %c0_i32_1 = arith.constant 0 : i32
    return %c0_i32, %c0_i32_0 : i32, i32
  }
  func.func @transform_3(%arg0: i32) -> (i32, i32) {
    %c0_i32 = arith.constant 0 : i32
    %c0_i32_0 = arith.constant 0 : i32
    return %arg0, %c0_i32 : i32, i32
  }
}

</mosaic_0001>

<bundles_post_ra>
// kernel: tpu_custom_call.1
= control target key start
LH: loop header
LB: loop body
LE: loop exit
PB: predicated region body
PF: predicated region fallthrough
CT: control target
= control target key end

     0   :  { %s2597_s12 = smov 0   ;;  %s3419_s0 = inlined_call_operand.vmem [shape: f32[256,6], index: 0, kind: input, shape index: {}]   ;;  %s3420_s1 = inlined_call_operand.vmem [shape: bf16[160,16], index: 1, kind: input, shape index: {}]   ;;  %s3421_s2 = inlined_call_operand.vmem [shape: f32[6,16], index: 2, kind: input, shape index: {}]   ;;  %s3422_s3 = inlined_call_operand.vmem [shape: f32[16,5], index: 3, kind: output, shape index: {}]  }
   0x1 LB: > { %s2603_s13 = sadd.s32 4294967295, %s2573_s12   ;;  %p2199_p0 = scmp.ge.s32.totalorder %s2573_s12, 1  ;;  %s2573_s12 = sphi %s2597_s12, %s13_s12  }
   0x2   : > { %p138_p1 = scmp.lt.s32.totalorder %s2573_s12, 3 }
   0x4   : > { %p139_p2 = pnand %p2199_p0, %p138_p1 }
   0x6   : > { %142 = sbr.rel (%p139_p2) target bundleno = 1200 (0x4b0), region = 32 }
   0xb   : > { %v437_v0 = vld [vmem:[%s3420_s1 + $0x20] sm:$0x7]  ;;  %vm468_vm0 = vcmask 1042432   ;;  %s2200_s16 = sshll.u32 %s2603_s13, 4  ;;  %v659_v3 = vld [vmem:[%s3420_s1 + $0x8] sm:$0x7]  ;;  %v172_v4 = vlaneseq }
   0xc   : > { %2544 = vmatprep.subr.msk.bf16.mxu0 %vm468_vm0, %v437_v0  ;;  %v470_v1 = vsel %vm468_vm0, %v437_v0, 0  ;;  %p162_p3 = scmp.lt.s32.totalorder %s2200_s16, 31  ;;  %v658_v2 = vld [vmem:[%s3420_s1] sm:$0x7]  ;;  %2545 = vmatprep.subr.msk.bf16.mxu1 %vm468_vm0, %v437_v0  ;;  %vm443_vm1 = vcmask 48128   ;;  %v661_v23 = vsel %vm468_vm0, %v659_v3, 0 }
   0xd   : > { %2375 = vmatpush3.bf16.msra.mxu0 %v470_v1  ;;  %2543 = vmatpush3.bf16.msra.mxu1 %v470_v1  ;;  %v2638_v11 = vshrl.u32 %v172_v4, 7  ;;  %v785_v13 = vsel %vm468_vm0, %v658_v2, 0  ;;  %vm995_vm11 = vcmask 130048   ;;  %p167_p4 = scmp.lt.s32.totalorder %s2603_s13, 1 }
   0xe   : > { %s3481_s16 = smov (!%p162_p3, %s2200_s16), 31  ;;  %2547 = vmatprep.subr.msk.bf16.mxu0 %vm468_vm0, %v658_v2  ;;  %2546 = vmatprep.subr.msk.bf16.mxu1 %vm468_vm0, %v659_v3 }
   0xf   : > { %s2201_s21 = sshll.u32 %s3481_s16, 3  ;;  %v3429_v26 = vand.u32 15, %v2638_v11  ;;  %vm585_vm2 = vcmp.lt.s32.totalorder %v2638_v11, 1  ;;  %v2696_v32 = vadd.s32 16, %v2638_v11  ;;  %v2710_v36 = vadd.s32 32, %v2638_v11  ;;  %s3483_s13 = smov (!%p167_p4, %s2603_s13), 1 }
  0x10   : > { %s2625_s24 = scalar_lea.vmem %s3419_s0, %s2201_s21  ;;  %v2743_v51 = vadd.s32 48, %v2638_v11  ;;  %v2754_v54 = vadd.s32 64, %v2638_v11  ;;  %vm1329_vm12 = vcmp.lt.s32.totalorder %v2638_v11, 2  ;;  %s2202_s26 = sshll.u32 %s3483_s13, 3 }
  0x11   : > { %v413_v5 = vld [vmem:[%s2625_s24] sm:$0xff]  ;;  %v414_v6 = vld [vmem:[%s2625_s24 + $0x8] sm:$0xff]  ;;  %v2630_v7 = vld [vmem:[%s2625_s24 + $0x10] sm:$0xff]  ;;  %vm2705_vm3 = vcmp.ge.s32.totalorder %v3429_v26, 1  ;;  %v3430_v39 = vand.u32 15, %v2696_v32  ;;  %v3428_v44 = vand.u32 15, %v2710_v36  ;;  %s170_s29 = scalar_lea.vmem %s3422_s3, %s2202_s26 }
  0x12   : > { %v429_v8 = vpack.c.bf16 %v414_v6, %v413_v5  ;;  %v2633_v9 = vld [vmem:[%s2625_s24 + $0x18] sm:$0xff]  ;;  %v2636_v10 = vld [vmem:[%s2625_s24 + $0x20] sm:$0xff]  ;;  %v2644_v14 = vld [vmem:[%s2625_s24 + $0x28] sm:$0xff]  ;;  %v569_v27 = vrot.slane %v413_v5, 7  ;;  %v570_v33 = vrot.slane %v414_v6, 7  ;;  %v571_v40 = vrot.slane %v2630_v7, 7 }
  0x13   : > { %v430_v12 = vpack.c.bf16 %v2633_v9, %v2630_v7  ;;  %v431_v15 = vpack.c.bf16 %v2644_v14, %v2636_v10  ;;  %v2650_v16 = vld [vmem:[%s2625_s24 + $0x60] sm:$0xff]  ;;  %v2653_v17 = vld [vmem:[%s2625_s24 + $0x68] sm:$0xff]  ;;  %v2656_v18 = vld [vmem:[%s2625_s24 + $0x78] sm:$0xff]  ;;  %v573_v43 = vrot.slane %v2636_v10, 7  ;;  %v572_v46 = vrot.slane %v2633_v9, 7 }
  0x14   : > { %2376 = vmatprep.mubr.msk.bf16.mxu0 %vm443_vm1, %v429_v8  ;;  %v2660_v19 = vld [vmem:[%s2625_s24 + $0x30] sm:$0xff]  ;;  %v2667_v21 = vld [vmem:[%s2625_s24 + $0x38] sm:$0xff]  ;;  %v2670_v22 = vld [vmem:[%s2625_s24 + $0x40] sm:$0xff]  ;;  %v2675_v24 = vpack.c.bf16 %v2653_v17, %v2650_v16  ;;  %v584_v28 = vrot.slane %v2656_v18, 7  ;;  %v600_v41 = vsel %vm585_vm2, %v569_v27, %v570_v33  ;;  %vm2734_vm4 = vcmp.ge.s32.totalorder %v3430_v39, 1 }
  0x15   : > { %2377 = vmatmul.mubr.msk.bf16.vlgmr.msra.gmra.mxu0 %vm443_vm1, %v430_v12  ;;  %v2663_v20 = vld [vmem:[%s2625_s24 + $0x70] sm:$0xff]  ;;  %v2678_v25 = vld [vmem:[%s2625_s24 + $0x48] sm:$0xff]  ;;  %v432_v30 = vpack.c.bf16 %v2667_v21, %v2660_v19  ;;  %v2714_v37 = vld [vmem:[%s2625_s24 + $0x58] sm:$0xff]  ;;  %v599_v49 = vsel %vm585_vm2, %v570_v33, %v571_v40  ;;  %v574_v50 = vrot.slane %v2644_v14, 7  ;;  %vm2747_vm5 = vcmp.ge.s32.totalorder %v3428_v44, 1 }
  0x16   : > { %2411 = vmatpush3.bf16.msra.mxu0 %v785_v13  ;;  %2380 = vmatprep.mubr.msk.bf16.mxu0 %vm443_vm1, %v431_v15  ;;  %v2684_v29 = vpack.c.bf16 %v2656_v18, %v2663_v20  ;;  %v433_v31 = vpack.c.bf16 %v2678_v25, %v2670_v22  ;;  %v601_v34 = vsel %vm585_vm2, %v584_v28, %v569_v27  ;;  %v2718_v38 = vld [vmem:[%s2625_s24 + $0x50] sm:$0xff]  ;;  %v636_v55 = vsel %vm2734_vm4, %v599_v49, 0.0  ;;  %v2558_v49 = vld [vmem:[%s3420_s1 + $0x18] sm:$0xff]  }
  0x17   : > { %2388 = vmatprep.mubr.msk.bf16.mxu1 %vm443_vm1, %v2675_v24  ;;  %v634_v42 = vsel %vm2705_vm3, %v601_v34, 0.0  ;;  %v434_v45 = vpack.c.bf16 %v2714_v37, %v2718_v38  ;;  %v597_v53 = vsel %vm585_vm2, %v572_v46, %v573_v43  ;;  %v598_v56 = vsel %vm585_vm2, %v571_v40, %v572_v46 }
  0x18   : > { %2389 = vmatmul.mubr.msk.bf16.vlgmr.msra.gmra.mxu1 %vm443_vm1, %v2684_v29  ;;  %v650_v47 = vpack.c.bf16 %v600_v41, %v634_v42  ;;  %v575_v57 = vrot.slane %v2660_v19, 7  ;;  %v596_v58 = vsel %vm585_vm2, %v573_v43, %v574_v50  ;;  %v638_v59 = vsel %vm2747_vm5, %v597_v53, 0.0 }
  0x19   : > { %2393 = vmatpush3.bf16.msra.mxu1 %v661_v23  ;;  %2394 = vmatprep.mubr.msk.bf16.mxu1 %vm443_vm1, %v429_v8  ;;  %v3427_v60 = vand.u32 15, %v2743_v51  ;;  %v577_v61 = vrot.slane %v2670_v22, 7  ;;  %v3426_v62 = vand.u32 15, %v2754_v54  ;;  %v651_v63 = vpack.c.bf16 %v598_v56, %v636_v55 }
  0x1a   : > { %v576_v0 = vrot.slane %v2667_v21, 7  ;;  %v652_v1 = vpack.c.bf16 %v596_v58, %v638_v59  ;;  %v578_v2 = vrot.slane %v2678_v25, 7  ;;  %v595_v4 = vsel %vm585_vm2, %v574_v50, %v575_v57  ;;  %2428 = vmatprep.subr.bf16.mxu1 %v2558_v49  ;;  %v2559_v50 = vld [vmem:[%s3420_s1 + $0x10] sm:$0xff]  }
  0x1b   : > { %vm2775_vm6 = vcmp.ge.s32.totalorder %v3427_v60, 1  ;;  %v2783_v5 = vadd.s32 80, %v2638_v11  ;;  %vm2787_vm7 = vcmp.ge.s32.totalorder %v3426_v62, 1  ;;  %v2794_v8 = vadd.s32 96, %v2638_v11  ;;  %2446 = vmatprep.subr.bf16.mxu0 %v2559_v50 }
  0x1c   : > { %v593_v7 = vsel %vm585_vm2, %v576_v0, %v577_v61  ;;  %v594_v9 = vsel %vm585_vm2, %v575_v57, %v576_v0  ;;  %v640_v10 = vsel %vm2775_vm6, %v595_v4, 0.0  ;;  %v592_v13 = vsel %vm585_vm2, %v577_v61, %v578_v2 }
  0x1d   : > { %2381 = vmatmul.mubr.msk.bf16.gmra.mxu0 %vm443_vm1, %v432_v30  ;;  %v642_v14 = vsel %vm2787_vm7, %v593_v7, 0.0  ;;  %v581_v19 = vrot.slane %v2650_v16, 7  ;;  %v3424_v21 = vand.u32 15, %v2794_v8  ;;  %v653_v22 = vpack.c.bf16 %v594_v9, %v640_v10 }
  0x1e   : > { %2384 = vmatprep.mubr.msk.bf16.mxu0 %vm443_vm1, %v433_v31  ;;  %v580_v23 = vrot.slane %v2714_v37, 7  ;;  %v654_v25 = vpack.c.bf16 %v592_v13, %v642_v14  ;;  %v582_v27 = vrot.slane %v2653_v17, 7  ;;  %v2824_v16 = vadd.s32 112, %v2638_v11  ;;  %v2560_v17 = vld [vmem:[%s3420_s1 + $0x30] sm:$0xff]  }
  0x1f   : > { %vm2830_vm9 = vcmp.ge.s32.totalorder %v3424_v21, 1  ;;  %v583_v37 = vrot.slane %v2663_v20, 7 }
  0x20   : > { %2395 = vmatmul.mubr.msk.bf16.vlgmr.msra.gmra.mxu1 %vm443_vm1, %v430_v12  ;;  %v579_v12 = vrot.slane %v2718_v38, 7  ;;  %3447 = vst [vmem:[#allocation2_spill] sm:$0xff] %v2824_v16  ;;  %v589_v33 = vsel %vm585_vm2, %v580_v23, %v581_v19  ;;  %v588_v38 = vsel %vm585_vm2, %v581_v19, %v582_v27  ;;  %v3423_v41 = vand.u32 15, %v2824_v16 }
  0x21   : > { %2398 = vmatprep.mubr.msk.bf16.mxu1 %vm443_vm1, %v431_v15  ;;  %v3425_v15 = vand.u32 15, %v2783_v5  ;;  %v646_v40 = vsel %vm2830_vm9, %v589_v33, 0.0  ;;  %v586_v46 = vsel %vm585_vm2, %v583_v37, %v584_v28  ;;  %2429 = vmatpush3.bf16.msra.mxu1 %v2558_v49 }
  0x22   : > { %v590_v34 = vsel %vm585_vm2, %v579_v12, %v580_v23  ;;  %v656_v43 = vpack.c.bf16 %v588_v38, %v646_v40  ;;  %vm2852_vm10 = vcmp.ge.s32.totalorder %v3423_v41, 1  ;;  %2464 = vmatprep.subr.bf16.mxu1 %v2560_v17 }
  0x23   : > { %vm2815_vm8 = vcmp.ge.s32.totalorder %v3425_v15, 1 }
  0x25   : > { %2385 = vmatmul.mubr.msk.bf16.gmra.mxu0 %vm443_vm1, %v434_v45 }
  0x26   : > { %2412 = vmatprep.mubr.msk.bf16.mxu0 %vm443_vm1, %v650_v47 }
  0x28   : > { %2399 = vmatmul.mubr.msk.bf16.gmra.mxu1 %vm443_vm1, %v432_v30 }
  0x29   : > { %2402 = vmatprep.mubr.msk.bf16.mxu1 %vm443_vm1, %v433_v31  ;;  %v591_v31 = vsel %vm585_vm2, %v578_v2, %v579_v12 }
  0x2d   : > { %2413 = vmatmul.mubr.msk.bf16.vlgmr.msra.gmra.mxu0 %vm443_vm1, %v651_v63 }
  0x2e   : > { %2416 = vmatprep.mubr.msk.bf16.mxu0 %vm443_vm1, %v652_v1  ;;  %2447 = vmatpush3.bf16.msra.mxu0 %v2559_v50 }
  0x30   : > { %2403 = vmatmul.mubr.msk.bf16.gmra.mxu1 %vm443_vm1, %v434_v45  ;;  %v587_v45 = vsel %vm585_vm2, %v582_v27, %v583_v37  ;;  %v2906_v37 = vld [vmem:[%s3421_s2] ss:$0 sm:$0xff] }
  0x31   : > { %2406 = vmatprep.mubr.msk.bf16.mxu1 %vm443_vm1, %v2675_v24  ;;  %v644_v24 = vsel %vm2815_vm8, %v591_v31, 0.0 }
  0x32   : > { %v655_v42 = vpack.c.bf16 %v590_v34, %v644_v24 }
  0x35   : > { %2417 = vmatmul.mubr.msk.bf16.gmra.mxu0 %vm443_vm1, %v653_v22 }
  0x36   : > { %2420 = vmatprep.mubr.msk.bf16.mxu0 %vm443_vm1, %v654_v25 }
  0x38   : > { %2407 = vmatmul.mubr.msk.bf16.gmra.mxu1 %vm443_vm1, %v2684_v29  ;;  %v648_v29 = vsel %vm2852_vm10, %v587_v45, 0.0 }
  0x39   : > { %v657_v47 = vpack.c.bf16 %v586_v46, %v648_v29 }
  0x3d   : > { %2421 = vmatmul.mubr.msk.bf16.gmra.mxu0 %vm443_vm1, %v655_v42 }
  0x3e   : > { %2424 = vmatprep.mubr.msk.bf16.mxu0 %vm443_vm1, %v656_v43 }
  0x45   : > { %2425 = vmatmul.mubr.msk.bf16.gmra.mxu0 %vm443_vm1, %v657_v47 }
  0xd5   : > { %v2871_v18 = vpop.f32.mrf.mxu0 }
  0xd7   : > { %v2873_v28 = vpop.f32.mrf.mxu0 }
  0xd8   : > { %v2877_v55 = vpop.f32.mrf.mxu1 }
  0xd9   : > { %v2875_v53 = vpop.f32.mrf.mxu0 }
  0xda   : > { %v2881_v57 = vpop.f32.mrf.mxu1 }
  0xdb   : > { %v2879_v56 = vpop.f32.mrf.mxu0 }
  0xdc   : > { %v2885_v59 = vpop.f32.mrf.mxu1 }
  0xdd   : > { %v2883_v58 = vpop.f32.mrf.mxu0 }
  0xde   : > { %v2889_v63 = vpop.f32.mrf.mxu1 }
  0xdf   : > { %v2887_v61 = vpop.f32.mrf.mxu0 }
  0xe0   : > { %v2396_v1 = vpop.f32.mrf.mxu1 }
  0xe1   : > { %v2891_v0 = vpop.f32.mrf.mxu0 }
  0xe2   : > { %v697_v4 = vpop.f32.mrf.mxu1 }
  0xe3   : > { %v2893_v2 = vpop.f32.mrf.mxu0 }
  0xe4   : > { %v2397_v9 = vpop.f32.mrf.mxu1 }
  0xe5   : > { %v2895_v7 = vpop.f32.mrf.mxu0 }
  0xe6   : > { %v700_v12 = vpop.f32.mrf.mxu1 }
  0xe7   : > { %v2897_v10 = vpop.f32.mrf.mxu0 }
  0xe8   : > { %v2400_v14 = vpop.f32.mrf.mxu1 }
  0xe9   : > { %v2899_v13 = vpop.f32.mrf.mxu0 }
  0xea   : > { %v713_v22 = vpop.f32.mrf.mxu1 }
  0xeb   : > { %v2901_v19 = vpop.f32.mrf.mxu0 }
  0xec   : > { %v2401_v25 = vpop.f32.mrf.mxu1 }
  0xed   : > { %v2414_v23 = vpop.f32.mrf.mxu0 }
  0xee   : > { %v716_v33 = vpop.f32.mrf.mxu1  ;;  %v830_v34 = vadd.f32 %v2414_v23, %v2396_v1 }
  0xef   : > { %v821_v27 = vpop.f32.mrf.mxu0 }
  0xf0   : > { %v822_v31 = vadd.f32 %v821_v27, %v697_v4  ;;  %v2404_v40 = vpop.f32.mrf.mxu1  ;;  %v2915_v47 = vadd.f32 %v2906_v37, %v830_v34 }
  0xf1   : > { %v2415_v24 = vpop.f32.mrf.mxu0 }
  0xf2   : > { %v833_v38 = vadd.f32 %v2415_v24, %v2397_v9  ;;  %v2909_v43 = vadd.f32 %v2906_v37, %v822_v31  ;;  %v729_v29 = vpop.f32.mrf.mxu1  ;;  %v907_v31 = vmax.f32 %v2915_v47, 0.0 }
  0xf3   : > { %v824_v42 = vpop.f32.mrf.mxu0 }
  0xf4   : > { %v2912_v45 = vadd.f32 %v2906_v37, %v833_v38  ;;  %v825_v46 = vadd.f32 %v824_v42, %v700_v12  ;;  %v2405_v9 = vpop.f32.mrf.mxu1  ;;  %v3433_v23 = vmax.f32 %v2909_v43, 0.0 }
  0xf5   : > { %v2418_v49 = vpop.f32.mrf.mxu0 }
  0xf6   : > { %v890_v50 = vadd.f32 %v2906_v37, %v825_v46  ;;  %v3432_v1 = vmax.f32 %v2912_v45, 0.0  ;;  %v846_v24 = vadd.f32 %v2418_v49, %v2400_v14  ;;  %v732_v21 = vpop.f32.mrf.mxu1 }
  0xf7   : > { %v837_v4 = vpop.f32.mrf.mxu0 }
  0xf8   : > { %v906_v27 = vmax.f32 %v890_v50, 0.0  ;;  %v838_v38 = vadd.f32 %v837_v4, %v713_v22  ;;  %v980_v34 = vpack.c.bf16 %v3432_v1, %v907_v31  ;;  %v2928_v47 = vadd.f32 %v2906_v37, %v846_v24 }
  0xf9   : > { %v2419_v41 = vpop.f32.mrf.mxu0 }
  0xfa   : > { %v979_v12 = vpack.c.bf16 %v906_v27, %v3433_v23  ;;  %v849_v42 = vadd.f32 %v2419_v41, %v2401_v25  ;;  %v893_v15 = vadd.f32 %v2906_v37, %v838_v38  ;;  %v2408_v25 = vpop.f32.mrf.mxu1  ;;  %v922_v23 = vrot.slane %v906_v27, 7 }
  0xfb   : > { %v840_v46 = vpop.f32.mrf.mxu0 }
  0xfc   : > { %v841_v62 = vadd.f32 %v840_v46, %v716_v33  ;;  %2430 = vmatprep.mubr.msk.bf16.mxu1 %vm995_vm11, %v979_v12  ;;  %v2931_v14 = vadd.f32 %v2906_v37, %v849_v42  ;;  %v909_v4 = vmax.f32 %v893_v15, 0.0  ;;  %v911_v12 = vmax.f32 %v2928_v47, 0.0  ;;  %v745_v44 = vpop.f32.mrf.mxu1 }
  0xfd   : > { %v2422_v22 = vpop.f32.mrf.mxu0  ;;  %2431 = vmatmul.mubr.msk.bf16.vlgmr.msra.gmra.mxu1 %vm995_vm11, %v980_v34 }
  0xfe   : > { %v894_v49 = vadd.f32 %v2906_v37, %v841_v62  ;;  %v3431_v41 = vmax.f32 %v2931_v14, 0.0  ;;  %v862_v46 = vadd.f32 %v2422_v22, %v2404_v40  ;;  %2465 = vmatpush3.bf16.msra.mxu1 %v2560_v17 }
  0xff   : > { %v853_v50 = vpop.f32.mrf.mxu0 }
 0x100   : > { %v910_v38 = vmax.f32 %v894_v49, 0.0  ;;  %v854_v33 = vadd.f32 %v853_v50, %v729_v29  ;;  %v982_v42 = vpack.c.bf16 %v3431_v41, %v911_v12  ;;  %v2942_v15 = vadd.f32 %v2906_v37, %v862_v46 }
 0x101   : > { %v2423_v24 = vpop.f32.mrf.mxu0 }
 0x102   : > { %v981_v60 = vpack.c.bf16 %v910_v38, %v909_v4  ;;  %v865_v26 = vadd.f32 %v2423_v24, %v2405_v9  ;;  %v897_v62 = vadd.f32 %v2906_v37, %v854_v33  ;;  %v2409_v9 = vpop.f32.mrf.mxu1  ;;  %v926_v27 = vrot.slane %v910_v38, 7 }
 0x103   : > { %v856_v34 = vpop.f32.mrf.mxu0 }
 0x104   : > { %v857_v39 = vadd.f32 %v856_v34, %v732_v21  ;;  %2434 = vmatprep.mubr.msk.bf16.mxu1 %vm995_vm11, %v981_v60  ;;  %v2945_v29 = vadd.f32 %v2906_v37, %v865_v26  ;;  %v913_v50 = vmax.f32 %v897_v62, 0.0  ;;  %v915_v60 = vmax.f32 %v2942_v15, 0.0  ;;  %v748_v41 = vpop.f32.mrf.mxu1 }
 0x105   : > { %v2426_v40 = vpop.f32.mrf.mxu0  ;;  %2435 = vmatmul.mubr.msk.bf16.gmra.mxu1 %vm995_vm11, %v982_v42 }
 0x106   : > { %v898_v47 = vadd.f32 %v2906_v37, %v857_v39  ;;  %v916_v22 = vmax.f32 %v2945_v29, 0.0  ;;  %v878_v24 = vadd.f32 %v2426_v40, %v2408_v25  ;;  %v923_v25 = vrot.slane %v907_v31, 7 }
 0x107   : > { %v869_v49 = vpop.f32.mrf.mxu0  ;;  %v925_v40 = vrot.slane %v909_v4, 7 }
 0x108   : > { %v914_v33 = vmax.f32 %v898_v47, 0.0  ;;  %v870_v21 = vadd.f32 %v869_v49, %v745_v44  ;;  %v984_v26 = vpack.c.bf16 %v916_v22, %v915_v60  ;;  %v903_v62 = vadd.f32 %v2906_v37, %v878_v24 }
 0x109   : > { %v2427_v46 = vpop.f32.mrf.mxu0  ;;  %v3453_v24 = vmax.f32 %v2912_v45, 0.0  ;;  %v947_v38 = vsel %vm585_vm2, %v925_v40, %v926_v27 }
 0x10a   : > { %v983_v34 = vpack.c.bf16 %v914_v33, %v913_v50  ;;  %v881_v1 = vadd.f32 %v2427_v46, %v2409_v9  ;;  %v901_v39 = vadd.f32 %v2906_v37, %v870_v21  ;;  %v950_v9 = vsel %vm585_vm2, %v922_v23, %v923_v25 }
 0x10b   : > { %v872_v42 = vpop.f32.mrf.mxu0  ;;  %v930_v35 = vrot.slane %v914_v33, 7 }
 0x10c   : > { %v873_v16 = vadd.f32 %v872_v42, %v748_v41  ;;  %2438 = vmatprep.mubr.msk.bf16.mxu1 %vm995_vm11, %v983_v34  ;;  %v904_v44 = vadd.f32 %v2906_v37, %v881_v1  ;;  %v917_v49 = vmax.f32 %v901_v39, 0.0  ;;  %v3452_v41 = vmax.f32 %v2909_v43, 0.0 }
 0x10d   : > { %2439 = vmatmul.mubr.msk.bf16.gmra.mxu1 %vm995_vm11, %v984_v26  ;;  %v924_v34 = vrot.slane %v3453_v24, 7  ;;  %v919_v1 = vmax.f32 %v903_v62, 0.0 }
 0x10e   : > { %v902_v15 = vadd.f32 %v2906_v37, %v873_v16  ;;  %v920_v47 = vmax.f32 %v904_v44, 0.0  ;;  %v921_v46 = vrot.slane %v3452_v41, 7  ;;  %v955_v16 = vsel %vm2734_vm4, %v950_v9, 0.0 }
 0x10f   : > { %v948_v4 = vsel %vm585_vm2, %v924_v34, %v925_v40  ;;  %v949_v48 = vsel %vm585_vm2, %v923_v25, %v924_v34  ;;  %v927_v44 = vrot.slane %v911_v12, 7  ;;  %v3454_v25 = vmax.f32 %v2931_v14, 0.0 }
 0x110   : > { %v918_v21 = vmax.f32 %v902_v15, 0.0  ;;  %v936_v42 = vrot.slane %v920_v47, 7  ;;  %v986_v37 = vpack.c.bf16 %v920_v47, %v919_v1  ;;  %v951_v43 = vsel %vm585_vm2, %v921_v46, %v922_v23 }
 0x111   : > { %v970_v62 = vpack.c.bf16 %v949_v48, %v955_v16  ;;  %v957_v15 = vsel %vm2747_vm5, %v948_v4, 0.0  ;;  %v929_v47 = vrot.slane %v913_v50, 7  ;;  %v946_v40 = vsel %vm585_vm2, %v926_v27, %v927_v44 }
 0x112   : > { %v985_v26 = vpack.c.bf16 %v918_v21, %v917_v49  ;;  %v952_v31 = vsel %vm585_vm2, %v936_v42, %v921_v46  ;;  %v971_v23 = vpack.c.bf16 %v947_v38, %v957_v15  ;;  %v928_v9 = vrot.slane %v3454_v25, 7 }
 0x113   : > { %v953_v45 = vsel %vm2705_vm3, %v952_v31, 0.0  ;;  %v959_v12 = vsel %vm2775_vm6, %v946_v40, 0.0  ;;  %v943_v50 = vsel %vm585_vm2, %v929_v47, %v930_v35  ;;  %v931_v41 = vrot.slane %v915_v60, 7 }
 0x114   : > { %2442 = vmatprep.mubr.msk.bf16.mxu1 %vm995_vm11, %v985_v26  ;;  %v969_v39 = vpack.c.bf16 %v951_v43, %v953_v45  ;;  %v944_v52 = vsel %vm585_vm2, %v928_v9, %v929_v47  ;;  %v945_v33 = vsel %vm585_vm2, %v927_v44, %v928_v9  ;;  %v933_v27 = vrot.slane %v917_v49, 7 }
 0x115   : > { %2443 = vmatmul.mubr.msk.bf16.gmra.mxu1 %vm995_vm11, %v986_v37  ;;  %v972_v46 = vpack.c.bf16 %v945_v33, %v959_v12  ;;  %v961_v14 = vsel %vm2787_vm7, %v944_v52, 0.0  ;;  %v934_v34 = vrot.slane %v918_v21, 7  ;;  %v942_v3 = vsel %vm585_vm2, %v930_v35, %v931_v41  ;;  %v3034_v35 = vld [vmem:[%s3421_s2 + $0x1] ss:$0 sm:$0xff] }
 0x116   : > { %2448 = vmatprep.mubr.msk.bf16.mxu0 %vm995_vm11, %v969_v39  ;;  %v973_v24 = vpack.c.bf16 %v943_v50, %v961_v14  ;;  %v932_v26 = vrot.slane %v916_v22, 7  ;;  %v963_v60 = vsel %vm2815_vm8, %v942_v3, 0.0  ;;  %v935_v16 = vrot.slane %v919_v1, 7  ;;  %v2561_v1 = vld [vmem:[%s3420_s1 + $0x28] sm:$0xff]  }
 0x117   : > { %2449 = vmatmul.mubr.msk.bf16.vlgmr.msra.gmra.mxu0 %vm995_vm11, %v970_v62  ;;  %v939_v49 = vsel %vm585_vm2, %v933_v27, %v934_v34  ;;  %2482 = vmatprep.subr.bf16.mxu0 %v2561_v1  ;;  %vm2576_vm6 = vmmov 0   ;;  %vm2069_vm7 = vcmask 1040384   ;;  %vm2071_vm8 = vcmask 1041408  }
 0x118   : > { %2452 = vmatprep.mubr.msk.bf16.mxu0 %vm995_vm11, %v971_v23  ;;  %v940_v6 = vsel %vm585_vm2, %v932_v26, %v933_v27  ;;  %v941_v21 = vsel %vm585_vm2, %v931_v41, %v932_v26  ;;  %v938_v30 = vsel %vm585_vm2, %v934_v34, %v935_v16  ;;  %v937_v4 = vsel %vm585_vm2, %v935_v16, %v936_v42  ;;  %v3042_v27 = vld [vmem:[%s3421_s2 + $0x2] ss:$0 sm:$0xff] }
 0x119   : > { %v974_v37 = vpack.c.bf16 %v941_v21, %v963_v60  ;;  %v965_v29 = vsel %vm2830_vm9, %v940_v6, 0.0  ;;  %v967_v31 = vsel %vm2852_vm10, %v938_v30, 0.0  ;;  %2483 = vmatpush3.bf16.msra.mxu0 %v2561_v1  ;;  %v518_v3 = vadd.f32 %v2875_v53, %v3042_v27 }
 0x11a   : > { %v975_v22 = vpack.c.bf16 %v939_v49, %v965_v29  ;;  %v976_v43 = vpack.c.bf16 %v937_v4, %v967_v31  ;;  %v507_v49 = vadd.f32 %v3042_v27, %v2873_v28  ;;  %v515_v29 = vadd.f32 %v2871_v18, %v3042_v27 }
 0x11b   : > { %vm2074_vm9 = vcmask 1043456   ;;  %vm2076_vm10 = vcmask 1044480  }
 0x11f   : > { %2453 = vmatmul.mubr.msk.bf16.gmra.mxu0 %vm995_vm11, %v972_v46 }
 0x120   : > { %2456 = vmatprep.mubr.msk.bf16.mxu0 %vm995_vm11, %v973_v24 }
 0x127   : > { %2457 = vmatmul.mubr.msk.bf16.gmra.mxu0 %vm995_vm11, %v974_v37 }
 0x128   : > { %2460 = vmatprep.mubr.msk.bf16.mxu0 %vm995_vm11, %v975_v22  ;;  %v510_v22 = vadd.f32 %v3042_v27, %v2879_v56 }
 0x12f   : > { %2461 = vmatmul.mubr.msk.bf16.gmra.mxu0 %vm995_vm11, %v976_v43 }
 0x1bd   : > { %v2432_v20 = vpop.f32.mrf.mxu1 }
 0x1bf   : > { %v1054_v45 = vpop.f32.mrf.mxu1 }
 0x1c1   : > { %v2433_v38 = vpop.f32.mrf.mxu1 }
 0x1c3   : > { %v1057_v48 = vpop.f32.mrf.mxu1 }
 0x1c5   : > { %v2436_v42 = vpop.f32.mrf.mxu1 }
 0x1c7   : > { %v1070_v39 = vpop.f32.mrf.mxu1 }
 0x1c9   : > { %v2437_v62 = vpop.f32.mrf.mxu1 }
 0x1cb   : > { %v1073_v44 = vpop.f32.mrf.mxu1 }
 0x1cd   : > { %v2440_v23 = vpop.f32.mrf.mxu1 }
 0x1cf   : > { %v1086_v33 = vpop.f32.mrf.mxu1 }
 0x1d1   : > { %v2441_v21 = vpop.f32.mrf.mxu1 }
 0x1d7   : > { %v2450_v15 = vpop.f32.mrf.mxu0 }
 0x1d8   : > { %v1190_v47 = vadd.f32 %v2450_v15, %v2432_v20 }
 0x1d9   : > { %v1181_v40 = vpop.f32.mrf.mxu0 }
 0x1da   : > { %v1182_v25 = vadd.f32 %v1181_v40, %v1054_v45  ;;  %v1251_v12 = vadd.f32 %v3034_v35, %v1190_v47  ;;  %v1089_v45 = vpop.f32.mrf.mxu1 }
 0x1db   : > { %v2451_v9 = vpop.f32.mrf.mxu0 }
 0x1dc   : > { %v1249_v52 = vadd.f32 %v3034_v35, %v1182_v25  ;;  %v1193_v50 = vadd.f32 %v2451_v9, %v2433_v38  ;;  %v1267_v26 = vmax.f32 %v1251_v12, 0.0 }
 0x1dd   : > { %v1184_v41 = vpop.f32.mrf.mxu0 }
 0x1de   : > { %v1252_v46 = vadd.f32 %v3034_v35, %v1193_v50  ;;  %v1185_v14 = vadd.f32 %v1184_v41, %v1057_v48  ;;  %v1265_v24 = vmax.f32 %v1249_v52, 0.0  ;;  %v3055_v17 = vadd.f32 %v1267_v26, %v515_v29  ;;  %v2444_v41 = vpop.f32.mrf.mxu1 }
 0x1df   : > { %v2454_v34 = vpop.f32.mrf.mxu0  ;;  %v523_v50 = vadd.f32 %v3042_v27, %v2887_v61  ;;  %v526_v61 = vadd.f32 %v3042_v27, %v2893_v2 }
 0x1e0   : > { %v1268_v60 = vmax.f32 %v1252_v46, 0.0  ;;  %v1250_v6 = vadd.f32 %v3034_v35, %v1185_v14  ;;  %v1206_v16 = vadd.f32 %v2454_v34, %v2436_v42  ;;  %v3053_v4 = vadd.f32 %v1265_v24, %v507_v49 }
 0x1e1   : > { %v1197_v37 = vpop.f32.mrf.mxu0 }
 0x1e2   : > { %v1284_v30 = vadd.f32 %v1268_v60, %v518_v3  ;;  %v1266_v31 = vmax.f32 %v1250_v6, 0.0  ;;  %v1198_v53 = vadd.f32 %v1197_v37, %v1070_v39  ;;  %v1255_v28 = vadd.f32 %v3034_v35, %v1206_v16  ;;  %v1102_v16 = vpop.f32.mrf.mxu1 }
 0x1e3   : > { %v2455_v43 = vpop.f32.mrf.mxu0  ;;  %v534_v39 = vadd.f32 %v2891_v0, %v3042_v27  ;;  %v1297_v15 = vmax.f32 %v3053_v4, 0.0  ;;  %v3461_v4 = vand.u32 15, %v2710_v36 }
 0x1e4   : > { %v1282_v1 = vadd.f32 %v1266_v31, %v510_v22  ;;  %v1209_v20 = vadd.f32 %v2455_v43, %v2437_v62  ;;  %v1253_v38 = vadd.f32 %v3034_v35, %v1198_v53  ;;  %v3059_v18 = vmax.f32 %v1284_v30, 0.0 }
 0x1e5   : > { %v1200_v48 = vpop.f32.mrf.mxu0  ;;  %v1299_v62 = vmax.f32 %v3055_v17, 0.0  ;;  %v1271_v9 = vmax.f32 %v1255_v28, 0.0  ;;  %vm3168_vm15 = vcmp.ge.s32.totalorder %v3461_v4, 2 }
 0x1e6   : > { %v3061_v42 = vmax.f32 %v1282_v1, 0.0  ;;  %v1256_v56 = vadd.f32 %v3034_v35, %v1209_v20  ;;  %v1269_v47 = vmax.f32 %v1253_v38, 0.0  ;;  %v1201_v40 = vadd.f32 %v1200_v48, %v1073_v44 }
 0x1e7   : > { %v2458_v25 = vpop.f32.mrf.mxu0  ;;  %v531_v44 = vadd.f32 %v2883_v58, %v3042_v27  ;;  %v1405_v24 = vpack.c.bf16 %v3059_v18, %v1299_v62 }
 0x1e8   : > { %v1272_v12 = vmax.f32 %v1256_v56, 0.0  ;;  %v1222_v52 = vadd.f32 %v2458_v25, %v2440_v23  ;;  %v1254_v46 = vadd.f32 %v3034_v35, %v1201_v40  ;;  %v1404_v0 = vpack.c.bf16 %v3061_v42, %v1297_v15  ;;  %v2445_v56 = vpop.f32.mrf.mxu1 }
 0x1e9   : > { %v1213_v14 = vpop.f32.mrf.mxu0  ;;  %v3081_v3 = vadd.f32 %v1269_v47, %v523_v50  ;;  %v3084_v6 = vadd.f32 %v1271_v9, %v531_v44  ;;  %v547_v25 = vadd.f32 %v2895_v7, %v3042_v27  ;;  %v542_v9 = vadd.f32 %v3042_v27, %v2901_v19 }
 0x1ea   : > { %v1288_v34 = vadd.f32 %v1272_v12, %v534_v39  ;;  %v1214_v23 = vadd.f32 %v1213_v14, %v1086_v33  ;;  %v1270_v26 = vmax.f32 %v1254_v46, 0.0  ;;  %2466 = vmatprep.mubr.msk.bf16.mxu1 %vm995_vm11, %v1404_v0  ;;  %v1259_v49 = vadd.f32 %v3034_v35, %v1222_v52  ;;  %v1105_v44 = vpop.f32.mrf.mxu1 }
 0x1eb   : > { %v2459_v60 = vpop.f32.mrf.mxu0  ;;  %2467 = vmatmul.mubr.msk.bf16.vlgmr.msra.gmra.mxu1 %vm995_vm11, %v1405_v24  ;;  %v1301_v30 = vmax.f32 %v3081_v3, 0.0  ;;  %v1303_v28 = vmax.f32 %v3084_v6, 0.0  ;;  %v555_v19 = vadd.f32 %v3042_v27, %v2881_v57 }
 0x1ec   : > { %v1257_v58 = vadd.f32 %v3034_v35, %v1214_v23  ;;  %v1286_v37 = vadd.f32 %v1270_v26, %v526_v61  ;;  %v1225_v33 = vadd.f32 %v2459_v60, %v2441_v21  ;;  %v3089_v22 = vmax.f32 %v1288_v34, 0.0 }
 0x1ed   : > { %v1216_v29 = vpop.f32.mrf.mxu0  ;;  %v1275_v20 = vmax.f32 %v1259_v49, 0.0  ;;  %v539_v21 = vadd.f32 %v3042_v27, %v2897_v10  ;;  %v566_v60 = vadd.f32 %v2885_v59, %v3042_v27  ;;  %v1314_v49 = vrot.slane %v3061_v42, 6 }
 0x1ee   : > { %v1217_v2 = vadd.f32 %v1216_v29, %v1089_v45  ;;  %v3092_v31 = vmax.f32 %v1286_v37, 0.0  ;;  %v1273_v53 = vmax.f32 %v1257_v58, 0.0  ;;  %v1260_v43 = vadd.f32 %v3034_v35, %v1225_v33 }
 0x1ef   : > { %v2462_v1 = vpop.f32.mrf.mxu0  ;;  %v550_v45 = vadd.f32 %v2899_v13, %v3042_v27  ;;  %v1407_v52 = vpack.c.bf16 %v3089_v22, %v1303_v28  ;;  %v3112_v46 = vadd.f32 %v1275_v20, %v547_v25  ;;  %v1315_v59 = vrot.slane %v1299_v62, 6 }
 0x1f0   : > { %v1258_v38 = vadd.f32 %v3034_v35, %v1217_v2  ;;  %v1238_v48 = vadd.f32 %v2462_v1, %v2444_v41  ;;  %v1276_v39 = vmax.f32 %v1260_v43, 0.0  ;;  %v1406_v40 = vpack.c.bf16 %v3092_v31, %v1301_v30 }
 0x1f1   : > { %v1229_v47 = vpop.f32.mrf.mxu0  ;;  %v3109_v10 = vadd.f32 %v1273_v53, %v539_v21  ;;  %v1307_v57 = vmax.f32 %v3112_v46, 0.0  ;;  %v563_v2 = vadd.f32 %v2877_v55, %v3042_v27  ;;  %v558_v53 = vadd.f32 %v3042_v27, %v2889_v63 }
 0x1f2   : > { %v1274_v12 = vmax.f32 %v1258_v38, 0.0  ;;  %v1292_v50 = vadd.f32 %v1276_v39, %v550_v45  ;;  %v1230_v13 = vadd.f32 %v1229_v47, %v1102_v16  ;;  %2470 = vmatprep.mubr.msk.bf16.mxu1 %vm995_vm11, %v1406_v40  ;;  %v1263_v7 = vadd.f32 %v3034_v35, %v1238_v48 }
 0x1f3   : > { %v2463_v41 = vpop.f32.mrf.mxu0  ;;  %2471 = vmatmul.mubr.msk.bf16.gmra.mxu1 %vm995_vm11, %v1407_v52  ;;  %v1305_v58 = vmax.f32 %v3109_v10, 0.0  ;;  %v3455_v21 = vand.u32 15, %v2696_v32  ;;  %v1343_v55 = vsel %vm1329_vm12, %v1314_v49, %v1315_v59  ;;  %v1317_v63 = vrot.slane %v1301_v30, 6 }
 0x1f4   : > { %v1290_v14 = vadd.f32 %v1274_v12, %v542_v9  ;;  %v1241_v0 = vadd.f32 %v2463_v41, %v2445_v56  ;;  %v1261_v24 = vadd.f32 %v3034_v35, %v1230_v13  ;;  %v3120_v23 = vmax.f32 %v1292_v50, 0.0 }
 0x1f5   : > { %v1232_v34 = vpop.f32.mrf.mxu0  ;;  %v1279_v37 = vmax.f32 %v1263_v7, 0.0  ;;  %vm3141_vm13 = vcmp.ge.s32.totalorder %v3455_v21, 2  ;;  %v1313_v45 = vrot.slane %v1297_v15, 6  ;;  %v1318_v32 = vrot.slane %v3092_v31, 6 }
 0x1f6   : > { %v3122_v61 = vmax.f32 %v1290_v14, 0.0  ;;  %v1264_v3 = vadd.f32 %v3034_v35, %v1241_v0  ;;  %v1233_v26 = vadd.f32 %v1232_v34, %v1105_v44  ;;  %v1277_v16 = vmax.f32 %v1261_v24, 0.0 }
 0x1f7   : > { %v1409_v48 = vpack.c.bf16 %v3120_v23, %v1307_v57  ;;  %v1295_v27 = vadd.f32 %v1279_v37, %v563_v2  ;;  %v3458_v56 = vand.u32 15, %v2638_v11  ;;  %v1316_v47 = vrot.slane %v3059_v18, 6 }
 0x1f8   : > { %v1280_v33 = vmax.f32 %v1264_v3, 0.0  ;;  %v1262_v29 = vadd.f32 %v3034_v35, %v1233_v26  ;;  %v1408_v43 = vpack.c.bf16 %v3122_v61, %v1305_v58  ;;  %v1293_v1 = vadd.f32 %v1277_v16, %v555_v19 }
 0x1f9   : > { %vm3156_vm14 = vcmp.ge.s32.totalorder %v3458_v56, 2  ;;  %v1380_v9 = vsel %vm3141_vm13, %v1343_v55, 0.0  ;;  %v1311_v12 = vmax.f32 %v1295_v27, 0.0  ;;  %v1341_v50 = vsel %vm1329_vm12, %v1316_v47, %v1317_v63  ;;  %v2564_v55 = vld [vmem:[%s3420_s1 + $0x48] sm:$0xff]  }
 0x1fa   : > { %v1296_v20 = vadd.f32 %v1280_v33, %v566_v60  ;;  %v1278_v38 = vmax.f32 %v1262_v29, 0.0  ;;  %2474 = vmatprep.mubr.msk.bf16.mxu1 %vm995_vm11, %v1408_v43  ;;  %v1309_v30 = vmax.f32 %v1293_v1, 0.0  ;;  %v1344_v13 = vsel %vm1329_vm12, %v1313_v45, %v1314_v49 }
 0x1fb   : > { %2475 = vmatmul.mubr.msk.bf16.gmra.mxu1 %vm995_vm11, %v1409_v48  ;;  %v1340_v36 = vsel %vm1329_vm12, %v1317_v63, %v1318_v32  ;;  %v1342_v46 = vsel %vm1329_vm12, %v1315_v59, %v1316_v47  ;;  %v1319_v19 = vrot.slane %v1303_v28, 6  ;;  %v1382_v44 = vsel %vm3168_vm15, %v1341_v50, 0.0  ;;  %v2563_v50 = vld [vmem:[%s3420_s1 + $0x38] sm:$0xff]  }
 0x1fc   : > { %v3148_v17 = vmax.f32 %v1296_v20, 0.0  ;;  %v1294_v62 = vadd.f32 %v1278_v38, %v558_v53  ;;  %v1395_v0 = vpack.c.bf16 %v1342_v46, %v1380_v9  ;;  %v1321_v24 = vrot.slane %v1305_v58, 6  ;;  %2518 = vmatprep.subr.bf16.mxu0 %v2563_v50 }
 0x1fd   : > { %v1396_v34 = vpack.c.bf16 %v1340_v36, %v1382_v44  ;;  %v1322_v3 = vrot.slane %v3122_v61, 6  ;;  %v3464_v26 = vand.u32 15, %v2743_v51  ;;  %v1339_v6 = vsel %vm1329_vm12, %v1318_v32, %v1319_v19 }
 0x1fe   : > { %v1328_v40 = vrot.slane %v3148_v17, 6  ;;  %v3162_v25 = vmax.f32 %v1294_v62, 0.0  ;;  %v1411_v14 = vpack.c.bf16 %v3148_v17, %v1311_v12  ;;  %v1320_v28 = vrot.slane %v3089_v22, 6 }
 0x1ff   : > { %vm3197_vm1 = vcmp.ge.s32.totalorder %v3464_v26, 2  ;;  %v3467_v58 = vand.u32 15, %v2754_v54  ;;  %v1336_v37 = vsel %vm1329_vm12, %v1321_v24, %v1322_v3  ;;  %v1323_v29 = vrot.slane %v1307_v57, 6 }
 0x200   : > { %v1410_v52 = vpack.c.bf16 %v3162_v25, %v1309_v30  ;;  %v1345_v10 = vsel %vm1329_vm12, %v1328_v40, %v1313_v45  ;;  %v1384_v49 = vsel %vm3197_vm1, %v1339_v6, 0.0  ;;  %v1337_v51 = vsel %vm1329_vm12, %v1320_v28, %v1321_v24  ;;  %v3273_v6 = vld [vmem:[%s3421_s2 + $0x3] ss:$0 sm:$0xff] }
 0x201   : > { %v1378_v41 = vsel %vm3156_vm14, %v1345_v10, 0.0  ;;  %vm3209_vm2 = vcmp.ge.s32.totalorder %v3467_v58, 2  ;;  %v1338_v33 = vsel %vm1329_vm12, %v1319_v19, %v1320_v28  ;;  %v1325_v59 = vrot.slane %v1309_v30, 6  ;;  %v2562_v10 = vld [vmem:[%s3420_s1 + $0x40] sm:$0xff]  }
 0x202   : > { %2478 = vmatprep.mubr.msk.bf16.mxu1 %vm995_vm11, %v1410_v52  ;;  %v1394_v7 = vpack.c.bf16 %v1344_v13, %v1378_v41  ;;  %v1397_v2 = vpack.c.bf16 %v1338_v33, %v1384_v49  ;;  %v1386_v53 = vsel %vm3209_vm2, %v1337_v51, 0.0  ;;  %v1326_v43 = vrot.slane %v3162_v25, 6  ;;  %2500 = vmatprep.subr.bf16.mxu1 %v2562_v10 }
 0x203   : > { %2479 = vmatmul.mubr.msk.bf16.gmra.mxu1 %vm995_vm11, %v1411_v14  ;;  %v1398_v54 = vpack.c.bf16 %v1336_v37, %v1386_v53  ;;  %v3470_v1 = vand.u32 15, %v2783_v5  ;;  %v1335_v38 = vsel %vm1329_vm12, %v1322_v3, %v1323_v29  ;;  %v1324_v57 = vrot.slane %v3120_v23, 6 }
 0x204   : > { %2484 = vmatprep.mubr.msk.bf16.mxu0 %vm995_vm11, %v1394_v7  ;;  %v3473_v21 = vand.u32 15, %v2794_v8  ;;  %v1332_v63 = vsel %vm1329_vm12, %v1325_v59, %v1326_v43  ;;  %v1327_v62 = vrot.slane %v1311_v12, 6  ;;  %v3476_v8 = vld [vmem:[#allocation2_spill] sm:$0xff]  ;;  %2501 = vmatpush3.bf16.msra.mxu1 %v2562_v10 }
 0x205   : > { %2485 = vmatmul.mubr.msk.bf16.vlgmr.msra.gmra.mxu0 %vm995_vm11, %v1395_v0  ;;  %vm3225_vm3 = vcmp.ge.s32.totalorder %v3470_v1, 2  ;;  %v1333_v5 = vsel %vm1329_vm12, %v1324_v57, %v1325_v59  ;;  %v1334_v27 = vsel %vm1329_vm12, %v1323_v29, %v1324_v57  ;;  %v3477_v47 = vand.u32 15, %v3476_v8 }
 0x206   : > { %2488 = vmatprep.mubr.msk.bf16.mxu0 %vm995_vm11, %v1396_v34  ;;  %v1388_v48 = vsel %vm3225_vm3, %v1335_v38, 0.0  ;;  %vm3237_vm4 = vcmp.ge.s32.totalorder %v3473_v21, 2  ;;  %v1331_v9 = vsel %vm1329_vm12, %v1326_v43, %v1327_v62  ;;  %v1330_v12 = vsel %vm1329_vm12, %v1327_v62, %v1328_v40  ;;  %2519 = vmatpush3.bf16.msra.mxu0 %v2563_v50 }
 0x207   : > { %v1399_v45 = vpack.c.bf16 %v1334_v27, %v1388_v48  ;;  %v1390_v32 = vsel %vm3237_vm4, %v1333_v5, 0.0  ;;  %vm3252_vm5 = vcmp.ge.s32.totalorder %v3477_v47, 2 }
 0x208   : > { %v1400_v56 = vpack.c.bf16 %v1332_v63, %v1390_v32  ;;  %v1392_v4 = vsel %vm3252_vm5, %v1331_v9, 0.0 }
 0x209   : > { %v1401_v52 = vpack.c.bf16 %v1330_v12, %v1392_v4 }
 0x20d   : > { %2489 = vmatmul.mubr.msk.bf16.gmra.mxu0 %vm995_vm11, %v1397_v2 }
 0x20e   : > { %2492 = vmatprep.mubr.msk.bf16.mxu0 %vm995_vm11, %v1398_v54 }
 0x215   : > { %2493 = vmatmul.mubr.msk.bf16.gmra.mxu0 %vm995_vm11, %v1399_v45 }
 0x216   : > { %2496 = vmatprep.mubr.msk.bf16.mxu0 %vm995_vm11, %v1400_v56 }
 0x21d   : > { %2497 = vmatmul.mubr.msk.bf16.gmra.mxu0 %vm995_vm11, %v1401_v52 }
 0x2ab   : > { %v2468_v13 = vpop.f32.mrf.mxu1 }
 0x2ad   : > { %v1478_v41 = vpop.f32.mrf.mxu1 }
 0x2af   : > { %v2469_v36 = vpop.f32.mrf.mxu1 }
 0x2b1   : > { %v1481_v46 = vpop.f32.mrf.mxu1 }
 0x2b3   : > { %v2472_v40 = vpop.f32.mrf.mxu1 }
 0x2b5   : > { %v1494_v14 = vpop.f32.mrf.mxu1 }
 0x2b7   : > { %v2473_v7 = vpop.f32.mrf.mxu1 }
 0x2b9   : > { %v1497_v0 = vpop.f32.mrf.mxu1 }
 0x2bb   : > { %v2476_v44 = vpop.f32.mrf.mxu1 }
 0x2bd   : > { %v1510_v49 = vpop.f32.mrf.mxu1 }
 0x2bf   : > { %v2477_v59 = vpop.f32.mrf.mxu1 }
 0x2c1   : > { %v1513_v27 = vpop.f32.mrf.mxu1 }
 0x2c3   : > { %v2480_v52 = vpop.f32.mrf.mxu1 }
 0x2c5   : > { %v2486_v19 = vpop.f32.mrf.mxu0 }
 0x2c6   : > { %v1614_v3 = vadd.f32 %v2486_v19, %v2468_v13 }
 0x2c7   : > { %v1605_v24 = vpop.f32.mrf.mxu0 }
 0x2c8   : > { %v1606_v34 = vadd.f32 %v1605_v24, %v1478_v41  ;;  %v3282_v29 = vadd.f32 %v3273_v6, %v1614_v3 }
 0x2c9   : > { %v2487_v26 = vpop.f32.mrf.mxu0 }
 0x2ca   : > { %v1617_v28 = vadd.f32 %v2487_v26, %v2469_v36  ;;  %v3276_v51 = vadd.f32 %v3273_v6, %v1606_v34  ;;  %v1691_v57 = vmax.f32 %v3282_v29, 0.0 }
 0x2cb   : > { %v1608_v58 = vpop.f32.mrf.mxu0 }
 0x2cc   : > { %v3279_v37 = vadd.f32 %v3273_v6, %v1617_v28  ;;  %v1609_v33 = vadd.f32 %v1608_v58, %v1481_v46  ;;  %v1689_v1 = vmax.f32 %v3276_v51, 0.0 }
 0x2cd   : > { %v2490_v2 = vpop.f32.mrf.mxu0 }
 0x2ce   : > { %v1674_v53 = vadd.f32 %v3273_v6, %v1609_v33  ;;  %v1692_v54 = vmax.f32 %v3279_v37, 0.0  ;;  %v1630_v48 = vadd.f32 %v2490_v2, %v2472_v40 }
 0x2cf   : > { %v1621_v43 = vpop.f32.mrf.mxu0 }
 0x2d0   : > { %v1690_v38 = vmax.f32 %v1674_v53, 0.0  ;;  %v1622_v21 = vadd.f32 %v1621_v43, %v1494_v14  ;;  %v1764_v62 = vpack.c.bf16 %v1692_v54, %v1691_v57  ;;  %v3295_v47 = vadd.f32 %v3273_v6, %v1630_v48 }
 0x2d1   : > { %v2491_v5 = vpop.f32.mrf.mxu0 }
 0x2d2   : > { %v1763_v63 = vpack.c.bf16 %v1690_v38, %v1689_v1  ;;  %v1633_v45 = vadd.f32 %v2491_v5, %v2473_v7  ;;  %v1677_v56 = vadd.f32 %v3273_v6, %v1622_v21  ;;  %v1695_v46 = vmax.f32 %v3295_v47, 0.0 }
 0x2d3   : > { %v1624_v32 = vpop.f32.mrf.mxu0 }
 0x2d4   : > { %v1625_v8 = vadd.f32 %v1624_v32, %v1497_v0  ;;  %2502 = vmatprep.mubr.msk.bf16.mxu1 %vm995_vm11, %v1763_v63  ;;  %v3298_v9 = vadd.f32 %v3273_v6, %v1633_v45  ;;  %v1693_v13 = vmax.f32 %v1677_v56, 0.0  ;;  %v1526_v0 = vpop.f32.mrf.mxu1  ;;  %v1706_v56 = vrot.slane %v1690_v38, 6 }
 0x2d5   : > { %v2494_v4 = vpop.f32.mrf.mxu0  ;;  %2503 = vmatmul.mubr.msk.bf16.vlgmr.msra.gmra.mxu1 %vm995_vm11, %v1764_v62 }
 0x2d6   : > { %v1678_v12 = vadd.f32 %v3273_v6, %v1625_v8  ;;  %v1696_v10 = vmax.f32 %v3298_v9, 0.0  ;;  %v1646_v40 = vadd.f32 %v2494_v4, %v2476_v44  ;;  %v2481_v33 = vpop.f32.mrf.mxu1 }
 0x2d7   : > { %v1637_v50 = vpop.f32.mrf.mxu0 }
 0x2d8   : > { %v1694_v41 = vmax.f32 %v1678_v12, 0.0  ;;  %v1638_v36 = vadd.f32 %v1637_v50, %v1510_v49  ;;  %v1766_v19 = vpack.c.bf16 %v1696_v10, %v1695_v46  ;;  %v3309_v28 = vadd.f32 %v3273_v6, %v1646_v40 }
 0x2d9   : > { %v2495_v14 = vpop.f32.mrf.mxu0 }
 0x2da   : > { %v1765_v7 = vpack.c.bf16 %v1694_v41, %v1693_v13  ;;  %v1649_v24 = vadd.f32 %v2495_v14, %v2477_v59  ;;  %v1681_v3 = vadd.f32 %v3273_v6, %v1638_v36  ;;  %v1699_v48 = vmax.f32 %v3309_v28, 0.0 }
 0x2db   : > { %v1640_v34 = vpop.f32.mrf.mxu0  ;;  %v1709_v36 = vrot.slane %v1693_v13, 6  ;;  %v1710_v38 = vrot.slane %v1694_v41, 6 }
 0x2dc   : > { %v1641_v26 = vadd.f32 %v1640_v34, %v1513_v27  ;;  %2506 = vmatprep.mubr.msk.bf16.mxu1 %vm995_vm11, %v1765_v7  ;;  %v3312_v49 = vadd.f32 %v3273_v6, %v1649_v24  ;;  %v1697_v53 = vmax.f32 %v1681_v3, 0.0  ;;  %v1529_v27 = vpop.f32.mrf.mxu1  ;;  %v1708_v24 = vrot.slane %v1692_v54, 6 }
 0x2dd   : > { %v2498_v44 = vpop.f32.mrf.mxu0  ;;  %2507 = vmatmul.mubr.msk.bf16.gmra.mxu1 %vm995_vm11, %v1766_v19  ;;  %v1705_v19 = vrot.slane %v1689_v1, 6  ;;  %v1731_v54 = vsel %vm1329_vm12, %v1709_v36, %v1710_v38 }
 0x2de   : > { %v1682_v58 = vadd.f32 %v3273_v6, %v1641_v26  ;;  %v1700_v29 = vmax.f32 %v3312_v49, 0.0  ;;  %v1662_v21 = vadd.f32 %v2498_v44, %v2480_v52  ;;  %v1707_v52 = vrot.slane %v1691_v57, 6 }
 0x2df   : > { %v1653_v2 = vpop.f32.mrf.mxu0  ;;  %v1732_v41 = vsel %vm1329_vm12, %v1708_v24, %v1709_v36  ;;  %v1735_v51 = vsel %vm1329_vm12, %v1705_v19, %v1706_v56  ;;  %v1711_v44 = vrot.slane %v1695_v46, 6 }
 0x2e0   : > { %v1698_v59 = vmax.f32 %v1682_v58, 0.0  ;;  %v1654_v43 = vadd.f32 %v1653_v2, %v1526_v0  ;;  %v1768_v62 = vpack.c.bf16 %v1700_v29, %v1699_v48  ;;  %v1687_v4 = vadd.f32 %v3273_v6, %v1662_v21 }
 0x2e1   : > { %v2499_v5 = vpop.f32.mrf.mxu0  ;;  %v1734_v14 = vsel %vm1329_vm12, %v1706_v56, %v1707_v52  ;;  %v1733_v35 = vsel %vm1329_vm12, %v1707_v52, %v1708_v24  ;;  %v1741_v58 = vsel %vm3168_vm15, %v1732_v41, 0.0  ;;  %v1712_v21 = vrot.slane %v1696_v10, 6 }
 0x2e2   : > { %v1767_v63 = vpack.c.bf16 %v1698_v59, %v1697_v53  ;;  %v1665_v45 = vadd.f32 %v2499_v5, %v2481_v33  ;;  %v1685_v8 = vadd.f32 %v3273_v6, %v1654_v43  ;;  %v1703_v34 = vmax.f32 %v1687_v4, 0.0 }
 0x2e3   : > { %v1656_v32 = vpop.f32.mrf.mxu0  ;;  %v1713_v33 = vrot.slane %v1697_v53, 6  ;;  %v1755_v2 = vpack.c.bf16 %v1731_v54, %v1741_v58  ;;  %v1714_v39 = vrot.slane %v1698_v59, 6  ;;  %v1730_v43 = vsel %vm1329_vm12, %v1710_v38, %v1711_v44 }
 0x2e4   : > { %v1657_v47 = vadd.f32 %v1656_v32, %v1529_v27  ;;  %2510 = vmatprep.mubr.msk.bf16.mxu1 %vm995_vm11, %v1767_v63  ;;  %v1688_v12 = vadd.f32 %v3273_v6, %v1665_v45  ;;  %v1701_v7 = vmax.f32 %v1685_v8, 0.0  ;;  %v1743_v46 = vsel %vm3197_vm1, %v1730_v43, 0.0 }
 0x2e5   : > { %2511 = vmatmul.mubr.msk.bf16.gmra.mxu1 %vm995_vm11, %v1768_v62  ;;  %v1728_v15 = vsel %vm1329_vm12, %v1712_v21, %v1713_v33  ;;  %v1727_v53 = vsel %vm1329_vm12, %v1713_v33, %v1714_v39  ;;  %v1729_v59 = vsel %vm1329_vm12, %v1711_v44, %v1712_v21  ;;  %v1715_v5 = vrot.slane %v1699_v48, 6  ;;  %v2285_v44 = vld [vmem:[%s3421_s2 + $0x4] ss:$0 sm:$0xff] }
 0x2e6   : > { %v1686_v50 = vadd.f32 %v3273_v6, %v1657_v47  ;;  %v1704_v40 = vmax.f32 %v1688_v12, 0.0  ;;  %v1739_v6 = vsel %vm3141_vm13, %v1734_v14, 0.0  ;;  %v1756_v63 = vpack.c.bf16 %v1729_v59, %v1743_v46 }
 0x2e7   : > { %v1754_v28 = vpack.c.bf16 %v1733_v35, %v1739_v6  ;;  %v1745_v9 = vsel %vm3209_vm2, %v1728_v15, 0.0  ;;  %v1717_v10 = vrot.slane %v1701_v7, 6  ;;  %v1726_v60 = vsel %vm1329_vm12, %v1714_v39, %v1715_v5 }
 0x2e8   : > { %v1702_v0 = vmax.f32 %v1686_v50, 0.0  ;;  %v1720_v3 = vrot.slane %v1704_v40, 6  ;;  %v1770_v57 = vpack.c.bf16 %v1704_v40, %v1703_v34  ;;  %v1757_v27 = vpack.c.bf16 %v1727_v53, %v1745_v9 }
 0x2e9   : > { %v1716_v45 = vrot.slane %v1700_v29, 6  ;;  %v1747_v48 = vsel %vm3225_vm3, %v1726_v60, 0.0  ;;  %v1719_v8 = vrot.slane %v1703_v34, 6  ;;  %v2575_v50 = vmov 0.0  }
 0x2ea   : > { %v1769_v26 = vpack.c.bf16 %v1702_v0, %v1701_v7  ;;  %v1736_v13 = vsel %vm1329_vm12, %v1720_v3, %v1705_v19  ;;  %v1718_v62 = vrot.slane %v1702_v0, 6  ;;  %2536 = vmatprep.subr.bf16.mxu1 %v2575_v50  ;;  %vm2080_vm13 = vcmask 1046528  }
 0x2eb   : > { %v1737_v37 = vsel %vm3156_vm14, %v1736_v13, 0.0  ;;  %v1724_v16 = vsel %vm1329_vm12, %v1716_v45, %v1717_v10  ;;  %v1725_v56 = vsel %vm1329_vm12, %v1715_v5, %v1716_v45  ;;  %v1721_v12 = vsel %vm1329_vm12, %v1719_v8, %v1720_v3  ;;  %2537 = vmatpush3.bf16.msra.mxu1 %v2564_v55 }
 0x2ec   : > { %2514 = vmatprep.mubr.msk.bf16.mxu1 %vm995_vm11, %v1769_v26  ;;  %v1753_v1 = vpack.c.bf16 %v1735_v51, %v1737_v37  ;;  %v1723_v32 = vsel %vm1329_vm12, %v1717_v10, %v1718_v62  ;;  %v1758_v47 = vpack.c.bf16 %v1725_v56, %v1747_v48  ;;  %v1749_v49 = vsel %vm3237_vm4, %v1724_v16, 0.0 }
 0x2ed   : > { %2515 = vmatmul.mubr.msk.bf16.gmra.mxu1 %vm995_vm11, %v1770_v57  ;;  %v1759_v29 = vpack.c.bf16 %v1723_v32, %v1749_v49  ;;  %v1722_v20 = vsel %vm1329_vm12, %v1718_v62, %v1719_v8  ;;  %vm2078_vm12 = vcmask 1045504  }
 0x2ee   : > { %2520 = vmatprep.mubr.msk.bf16.mxu0 %vm995_vm11, %v1753_v1  ;;  %v1751_v4 = vsel %vm3252_vm5, %v1722_v20, 0.0  ;;  %2538 = vmatprep.mubr.msk.bf16.mxu1 %vm2576_vm6, %v2575_v50 }
 0x2ef   : > { %2521 = vmatmul.mubr.msk.bf16.vlgmr.msra.gmra.mxu0 %vm995_vm11, %v1754_v28  ;;  %v1760_v52 = vpack.c.bf16 %v1721_v12, %v1751_v4 }
 0x2f0   : > { %2524 = vmatprep.mubr.msk.bf16.mxu0 %vm995_vm11, %v1755_v2 }
 0x2f7   : > { %2525 = vmatmul.mubr.msk.bf16.gmra.mxu0 %vm995_vm11, %v1756_v63 }
 0x2f8   : > { %2528 = vmatprep.mubr.msk.bf16.mxu0 %vm995_vm11, %v1757_v27 }
 0x2ff   : > { %2529 = vmatmul.mubr.msk.bf16.gmra.mxu0 %vm995_vm11, %v1758_v47 }
 0x300   : > { %2532 = vmatprep.mubr.msk.bf16.mxu0 %vm995_vm11, %v1759_v29 }
 0x307   : > { %2533 = vmatmul.mubr.msk.bf16.gmra.mxu0 %vm995_vm11, %v1760_v52 }
 0x395   : > { %v2504_v36 = vpop.f32.mrf.mxu1 }
 0x397   : > { %v1837_v40 = vpop.f32.mrf.mxu1 }
 0x399   : > { %v2505_v14 = vpop.f32.mrf.mxu1 }
 0x39b   : > { %v1839_v30 = vpop.f32.mrf.mxu1 }
 0x39d   : > { %v2508_v38 = vpop.f32.mrf.mxu1 }
 0x39f   : > { %v1851_v7 = vpop.f32.mrf.mxu1 }
 0x3a1   : > { %v2509_v11 = vpop.f32.mrf.mxu1 }
 0x3a3   : > { %v1853_v0 = vpop.f32.mrf.mxu1 }
 0x3a5   : > { %v2512_v19 = vpop.f32.mrf.mxu1 }
 0x3a7   : > { %v1865_v24 = vpop.f32.mrf.mxu1 }
 0x3a9   : > { %v2513_v34 = vpop.f32.mrf.mxu1 }
 0x3ab   : > { %v1867_v3 = vpop.f32.mrf.mxu1 }
 0x3ad   : > { %v2516_v26 = vpop.f32.mrf.mxu1 }
 0x3af   : > { %v1879_v6 = vpop.f32.mrf.mxu1  ;;  %v2522_v57 = vpop.f32.mrf.mxu0 }
 0x3b1   : > { %v1956_v13 = vpop.f32.mrf.mxu0  ;;  %v2517_v47 = vpop.f32.mrf.mxu1 }
 0x3b3   : > { %v2523_v41 = vpop.f32.mrf.mxu0  ;;  %v1881_v36 = vpop.f32.mrf.mxu1 }
 0x3b4   : > { %v1966_v1 = vadd.f32 %v2523_v41, %v2505_v14 }
 0x3b5   : > { %v1958_v51 = vpop.f32.mrf.mxu0 }
 0x3b6   : > { %v1959_v54 = vadd.f32 %v1958_v51, %v1839_v30  ;;  %v2017_v39 = vadd.f32 %v2285_v44, %v1966_v1 }
 0x3b7   : > { %v2526_v37 = vpop.f32.mrf.mxu0 }
 0x3b8   : > { %v2016_v58 = vadd.f32 %v2285_v44, %v1959_v54  ;;  %v2025_v5 = vmax.f32 %v2017_v39, 0.0 }
 0x3b9   : > { %v1970_v35 = vpop.f32.mrf.mxu0 }
 0x3ba   : > { %v2024_v15 = vmax.f32 %v2016_v58, 0.0  ;;  %v2033_v48 = vadd.f32 %v2025_v5, %v3059_v18 }
 0x3bb   : > { %v2527_v28 = vpop.f32.mrf.mxu0 }
 0x3bc   : > { %v1980_v43 = vadd.f32 %v2527_v28, %v2509_v11  ;;  %v2032_v27 = vadd.f32 %v2024_v15, %v3061_v42  ;;  %v2041_v12 = vmax.f32 %v2033_v48, 0.0 }
 0x3bd   : > { %v1972_v33 = vpop.f32.mrf.mxu0 }
 0x3be   : > { %v1973_v2 = vadd.f32 %v1972_v33, %v1853_v0  ;;  %v2019_v63 = vadd.f32 %v2285_v44, %v1980_v43  ;;  %v2040_v49 = vmax.f32 %v2032_v27, 0.0  ;;  %v2052_v11 = vrot.slane %v2041_v12, 6 }
 0x3bf   : > { %v2530_v21 = vpop.f32.mrf.mxu0 }
 0x3c0   : > { %v2018_v46 = vadd.f32 %v2285_v44, %v1973_v2  ;;  %v2027_v16 = vmax.f32 %v2019_v63, 0.0  ;;  %v2049_v40 = vrot.slane %v2040_v49, 7 }
 0x3c1   : > { %v1984_v53 = vpop.f32.mrf.mxu0 }
 0x3c2   : > { %v2026_v59 = vmax.f32 %v2018_v46, 0.0  ;;  %v2035_v52 = vadd.f32 %v2027_v16, %v3089_v22  ;;  %v2070_v22 = vsel %vm2069_vm7, %v2049_v40, %v2052_v11 }
 0x3c3   : > { %v2531_v9 = vpop.f32.mrf.mxu0 }
 0x3c4   : > { %v1994_v10 = vadd.f32 %v2531_v9, %v2513_v34  ;;  %v2034_v60 = vadd.f32 %v2026_v59, %v3092_v31  ;;  %v2043_v0 = vmax.f32 %v2035_v52, 0.0 }
 0x3c5   : > { %v1986_v62 = vpop.f32.mrf.mxu0 }
 0x3c6   : > { %v1987_v45 = vadd.f32 %v1986_v62, %v1867_v3  ;;  %v2021_v32 = vadd.f32 %v2285_v44, %v1994_v10  ;;  %v2042_v20 = vmax.f32 %v2034_v60, 0.0  ;;  %v2058_v6 = vrot.slane %v2043_v0, 4 }
 0x3c7   : > { %v2534_v56 = vpop.f32.mrf.mxu0 }
 0x3c8   : > { %v2020_v8 = vadd.f32 %v2285_v44, %v1987_v45  ;;  %v2029_v55 = vmax.f32 %v2021_v32, 0.0  ;;  %v2055_v14 = vrot.slane %v2042_v20, 5 }
 0x3c9   : > { %v1998_v29 = vpop.f32.mrf.mxu0 }
 0x3ca   : > { %v2028_v4 = vmax.f32 %v2020_v8, 0.0  ;;  %v2037_v19 = vadd.f32 %v2029_v55, %v3120_v23  ;;  %v2072_v3 = vsel %vm2071_vm8, %v2070_v22, %v2055_v14 }
 0x3cb   : > { %v2535_v42 = vpop.f32.mrf.mxu0  ;;  %v2073_v41 = vsel %vm468_vm0, %v2072_v3, %v2058_v6  ;;  %vm2140_vm0 = vcmask 39936  }
 0x3cc   : > { %v2036_v50 = vadd.f32 %v2028_v4, %v3122_v61  ;;  %v2008_v31 = vadd.f32 %v2535_v42, %v2517_v47  ;;  %v2045_v57 = vmax.f32 %v2037_v19, 0.0 }
 0x3cd   : > { %v2000_v18 = vpop.f32.mrf.mxu0 }
 0x3ce   : > { %v2044_v30 = vmax.f32 %v2036_v50, 0.0  ;;  %v2023_v38 = vadd.f32 %v2285_v44, %v2008_v31  ;;  %v2001_v7 = vadd.f32 %v2000_v18, %v1881_v36  ;;  %v2064_v23 = vrot.slane %v2045_v57, 2 }
 0x3d0   : > { %v2022_v24 = vadd.f32 %v2285_v44, %v2001_v7  ;;  %v2031_v34 = vmax.f32 %v2023_v38, 0.0  ;;  %v2061_v26 = vrot.slane %v2044_v30, 3 }
 0x3d2   : > { %v2030_v61 = vmax.f32 %v2022_v24, 0.0  ;;  %v2039_v51 = vadd.f32 %v2031_v34, %v3148_v17  ;;  %v2075_v37 = vsel %vm2074_vm9, %v2073_v41, %v2061_v26  ;;  %v2286_v17 = vld [vmem:[%s3421_s2 + $0x5] ss:$0 sm:$0xff] }
 0x3d3   : > { %v2077_v28 = vsel %vm2076_vm10, %v2075_v37, %v2064_v23 }
 0x3d4   : > { %v2038_v13 = vadd.f32 %v2030_v61, %v3162_v25  ;;  %v2047_v1 = vmax.f32 %v2039_v51, 0.0 }
 0x3d6   : > { %v2046_v54 = vmax.f32 %v2038_v13, 0.0 }
 0x3d8   : > { %v2067_v35 = vrot.slane %v2046_v54, 1 }
 0x3da   : > { %v2079_v44 = vsel %vm2078_vm12, %v2077_v28, %v2067_v35 }
 0x3db   : > { %v2081_v58 = vsel %vm2080_vm13, %v2079_v44, %v2047_v1 }
 0x3dc   : > { %v2082_v33 = vpack.c.bf16 %v2081_v58, %v2081_v58 }
 0x3de   : > { %2539 = vmatmul.mubr.msk.bf16.vlgmr.msra.gmra.mxu1 %vm995_vm11, %v2082_v33 }
 0x49e   : > { %v2133_v25 = vpop.f32.mrf.mxu1 }
 0x49f   : > { %v2134_v2 = vadd.f32 %v2286_v17, %v2133_v25 }
 0x4a0   : > { %v2540_v39 = vpop.f32.mrf.mxu1 }
 0x4a1   : > { %2565 = vtanh.f32 %v2134_v2 }
 0x4a2   : > { %v2136_v43 = vpop.f32.mrf.mxu1 }
 0x4a4   : > { %v2541_v21 = vpop.f32.mrf.mxu1 }
 0x4ae   : > { %v2566_v46 = vpop.eup %2565 }
 0x4af   : > { %2141 = vst.msk [vmem:[%s170_s29] sm:$0xff] %vm2140_vm0, %v2566_v46 }
 0x4b0 PF: > { %s13_s12 = sadd.s32 1, %s2573_s12  }
 0x4b1   : > { %p10_p5 = scmp.ge.s32.totalorder %s13_s12, 4  }
 0x4b3   :  { %12 = sbr.rel (!%p10_p5) target bundleno = 1 (0x1), region = 62 }

</bundles_post_ra>
